<compile_context>
chip_gen: v7x
topology: tpu7x:2x2x1
jax: 0.10.0
libtpu: 0.0.40
codegen_flags: <defaults>
</compile_context>

<pallas_src>
import functools

import jax
import jax.numpy as jnp
from jax.experimental import pallas as pl
from jax.experimental.pallas import tpu as pltpu


def _decoder_block_kernel(
    x_ref, enc_ref, self_bias_ref, cross_bias_ref,
    wqkv1_ref, wo1_ref,
    wq2_ref, wkv2_ref, wo2_ref,
    w1_ref, b1_ref, w2_ref, b2_ref,
    ln_g_ref, ln_b_ref,
    o_ref,
    ctx_ref,
    *, num_heads: int, d_k: int,
):
    D = num_heads * d_k

    x = x_ref[...].astype(jnp.float32)      # (bt*S_tgt, D)
    enc = enc_ref[...].astype(jnp.float32)  # (bt*S_src, D)

    def layer_norm(v, idx):
        # tutorial LayerNormalization: alpha*(x-mean)/(std+eps)+bias,
        # Bessel-corrected std (torch default), eps=1e-6.
        g = ln_g_ref[idx:idx + 1, :]         # (1, D)
        b = ln_b_ref[idx:idx + 1, :]         # (1, D)
        mean = jnp.mean(v, axis=-1, keepdims=True)
        var = jnp.sum((v - mean) ** 2, axis=-1, keepdims=True) / (D - 1)
        std = jnp.sqrt(var)
        return g * (v - mean) / (std + 1e-6) + b

    scale = 1.0 / jnp.sqrt(jnp.float32(d_k))

    def mha(q_all, k_all, v_all, bias, wo_ref):
        # q_all: (rows_q, D); k_all/v_all: (rows_kv, D); bias: (rows_q, rows_kv) additive mask.
        # Cross-batch / disallowed entries carry -1e9 -> exp underflows to exactly 0, so the
        # folded-batch matmuls are numerically identical to per-batch attention.
        for h in range(num_heads):           # static unroll over heads
            lo = h * d_k
            qh = q_all[:, lo:lo + d_k]       # (rows_q,  d_k)  lane slice
            kh = k_all[:, lo:lo + d_k]       # (rows_kv, d_k)
            vh = v_all[:, lo:lo + d_k]       # (rows_kv, d_k)
            # q @ k^T via dot_general (contract last dims) -> no explicit transpose needed.
            s = jax.lax.dot_general(
                qh, kh, (((1,), (1,)), ((), ())),
                preferred_element_type=jnp.float32) * scale + bias
            # manual softmax (max-sub / exp / row-sum); the divide is applied after the
            # context matmul so it only touches d_k lanes per row.
            m = jnp.max(s, axis=-1, keepdims=True)
            e = jnp.exp(s - m)
            l = jnp.sum(e, axis=-1, keepdims=True)
            ctx = jnp.dot(e, vh, preferred_element_type=jnp.float32) / l
            # head output goes straight into the VMEM ctx scratch (no jnp.concatenate).
            ctx_ref[:, lo:lo + d_k] = ctx
        return jnp.dot(ctx_ref[...], wo_ref[...], preferred_element_type=jnp.float32)

    # residual 0: self attention (pre-norm), fused QKV projection over the folded batch
    n0 = layer_norm(x, 0)
    qkv = jnp.dot(n0, wqkv1_ref[...], preferred_element_type=jnp.float32)   # (rows_q, 3D)
    x = x + mha(qkv[:, 0:D], qkv[:, D:2 * D], qkv[:, 2 * D:3 * D],
                self_bias_ref[...], wo1_ref)

    # residual 1: cross attention with (unnormalized) encoder output, fused KV projection
    n1 = layer_norm(x, 1)
    q2 = jnp.dot(n1, wq2_ref[...], preferred_element_type=jnp.float32)
    kv = jnp.dot(enc, wkv2_ref[...], preferred_element_type=jnp.float32)    # (rows_kv, 2D)
    x = x + mha(q2, kv[:, 0:D], kv[:, D:2 * D], cross_bias_ref[...], wo2_ref)

    # residual 2: feed forward (relu MLP)
    n2 = layer_norm(x, 2)
    hidden = jnp.maximum(
        jnp.dot(n2, w1_ref[...], preferred_element_type=jnp.float32) + b1_ref[...], 0.0)
    x = x + jnp.dot(hidden, w2_ref[...], preferred_element_type=jnp.float32) + b2_ref[...]

    o_ref[...] = x.astype(o_ref.dtype)


def _make_bias_masks(bt, s_tgt, s_src, src_mask):
    """Additive (0 / -1e9) masks for the folded-batch slab, built once in the wrapper."""
    rows_q, rows_kv = bt * s_tgt, bt * s_src
    rq = jnp.arange(rows_q)
    ck = jnp.arange(rows_kv)
    # Self-attention: same batch element within the folded slab AND causal.
    same_b = (rq[:, None] // s_tgt) == (rq[None, :] // s_tgt)
    causal = (rq[None, :] % s_tgt) <= (rq[:, None] % s_tgt)
    self_allowed = same_b & causal
    # Cross-attention: same batch element AND src padding mask (0 => masked).
    same_b2 = (rq[:, None] // s_tgt) == (ck[None, :] // s_src)
    src_ok = src_mask.reshape(-1)[ck % s_src] != 0
    cross_allowed = same_b2 & src_ok[None, :]
    neg = jnp.float32(-1e9)
    self_bias = jnp.where(self_allowed, jnp.float32(0.0), neg)
    cross_bias = jnp.where(cross_allowed, jnp.float32(0.0), neg)
    return self_bias, cross_bias


def decoder_block(x, enc, src_mask, params, num_heads, *, batch_tile=2):
    """Pre-norm decoder block.  Assumes a causal tgt mask (built in the wrapper)."""
    B, S_tgt, D = x.shape
    _, S_src, _ = enc.shape
    d_ff = params["w1"].shape[1]
    assert D % num_heads == 0
    d_k = D // num_heads
    bt = min(batch_tile, B)
    while B % bt:
        bt -= 1
    rows_q, rows_kv = bt * S_tgt, bt * S_src

    # Batch-folded 2D activation layout (kernel works on (bt*S, D) slabs).
    x2d = x.reshape(B * S_tgt, D)
    enc2d = enc.reshape(B * S_src, D)

    # Fuse projection weights in the wrapper (free at trace time).
    wqkv1 = jnp.concatenate([params["wq1"], params["wk1"], params["wv1"]], axis=1)  # (D, 3D)
    wkv2 = jnp.concatenate([params["wk2"], params["wv2"]], axis=1)                  # (D, 2D)

    # Additive masks for one folded slab (identical across grid steps).
    self_bias, cross_bias = _make_bias_masks(bt, S_tgt, S_src, src_mask)

    def const(shape):
        return pl.BlockSpec(shape, lambda i: tuple(0 for _ in shape))

    in_specs = [
        pl.BlockSpec((rows_q, D), lambda i: (i, 0)),      # x (folded)
        pl.BlockSpec((rows_kv, D), lambda i: (i, 0)),     # encoder output (folded)
        const((rows_q, rows_q)),                          # self-attn additive mask
        const((rows_q, rows_kv)),                         # cross-attn additive mask
        const((D, 3 * D)), const((D, D)),                 # self-attn: fused QKV, Wo
        const((D, D)), const((D, 2 * D)), const((D, D)),  # cross-attn: Wq, fused KV, Wo
        const((D, d_ff)), const((1, d_ff)),               # ffn linear_1
        const((d_ff, D)), const((1, D)),                  # ffn linear_2
        const((3, D)), const((3, D)),                     # layernorm gamma / beta (3 residuals)
    ]

    kernel = functools.partial(_decoder_block_kernel, num_heads=num_heads, d_k=d_k)

    # Advisory cost estimate so XLA can schedule surrounding ops sensibly.
    tokens, src_tokens = B * S_tgt, B * S_src
    flops = int(
        2 * tokens * D * (3 * D)                      # self-attn fused QKV proj
        + 2 * tokens * D * D                          # self-attn output proj
        + 2 * tokens * D * D                          # cross-attn Q proj
        + 2 * src_tokens * D * (2 * D)                # cross-attn fused KV proj
        + 2 * tokens * D * D                          # cross-attn output proj
        + 4 * tokens * D * d_ff                       # FFN (two matmuls)
        + 4 * B * num_heads * S_tgt * S_tgt * d_k     # self-attn scores + context
        + 4 * B * num_heads * S_tgt * S_src * d_k)    # cross-attn scores + context
    transcendentals = int(B * num_heads * S_tgt * (S_tgt + S_src))
    weight_bytes = 4 * sum(int(w.size) for w in (
        wqkv1, params["wo1"], params["wq2"], wkv2, params["wo2"],
        params["w1"], params["b1"], params["w2"], params["b2"],
        params["ln_g"], params["ln_b"]))
    bytes_accessed = int(
        4 * (x2d.size + enc2d.size + self_bias.size + cross_bias.size + tokens * D)
        + weight_bytes * (B // bt))

    out2d = pl.pallas_call(
        kernel,
        out_shape=jax.ShapeDtypeStruct((B * S_tgt, D), x.dtype),
        grid_spec=pltpu.PrefetchScalarGridSpec(
            num_scalar_prefetch=0,
            grid=(B // bt,),
            in_specs=in_specs,
            out_specs=pl.BlockSpec((rows_q, D), lambda i: (i, 0)),
            scratch_shapes=[pltpu.VMEM((rows_q, D), jnp.float32)],   # per-step ctx buffer
        ),
        compiler_params=pltpu.CompilerParams(
            dimension_semantics=("parallel",),        # shards batch tiles across v7x's 2 TCs
            vmem_limit_bytes=32 * 1024 * 1024,        # raise further for realistic model sizes
        ),
        cost_estimate=pl.CostEstimate(
            flops=flops, transcendentals=transcendentals, bytes_accessed=bytes_accessed),
    )(
        x2d, enc2d, self_bias, cross_bias,
        wqkv1, params["wo1"],
        params["wq2"], wkv2, params["wo2"],
        params["w1"], params["b1"], params["w2"], params["b2"],
        params["ln_g"], params["ln_b"],
    )
    return out2d.reshape(B, S_tgt, D)


def decoder_block_ref(x, enc, tgt_mask, src_mask, p, num_heads):
    """Plain-JAX reference mirroring the PyTorch DecoderBlock semantics (eval mode)."""
    B, S, D = x.shape
    d_k = D // num_heads

    def layer_norm(v, g, b):
        mean = jnp.mean(v, axis=-1, keepdims=True)
        var = jnp.sum((v - mean) ** 2, axis=-1, keepdims=True) / (D - 1)
        return g * (v - mean) / (jnp.sqrt(var) + 1e-6) + b

    def mha(q_in, kv_in, mask, wq, wk, wv, wo):
        def split(t):
            return t.reshape(t.shape[0], t.shape[1], num_heads, d_k).transpose(0, 2, 1, 3)
        q, k, v = split(q_in @ wq), split(kv_in @ wk), split(kv_in @ wv)
        scores = jnp.einsum("bhqd,bhkd->bhqk", q, k) / jnp.sqrt(jnp.float32(d_k))
        scores = jnp.where(mask[None, None] == 0, -1e9, scores)
        probs = jax.nn.softmax(scores, axis=-1)
        ctx = jnp.einsum("bhqk,bhkd->bhqd", probs, v)
        ctx = ctx.transpose(0, 2, 1, 3).reshape(q_in.shape[0], -1, num_heads * d_k)
        return ctx @ wo

    n = layer_norm(x, p["ln_g"][0], p["ln_b"][0])
    x = x + mha(n, n, tgt_mask, p["wq1"], p["wk1"], p["wv1"], p["wo1"])
    n = layer_norm(x, p["ln_g"][1], p["ln_b"][1])
    x = x + mha(n, enc, src_mask, p["wq2"], p["wk2"], p["wv2"], p["wo2"])
    n = layer_norm(x, p["ln_g"][2], p["ln_b"][2])
    x = x + jnp.maximum(n @ p["w1"] + p["b1"], 0.0) @ p["w2"] + p["b2"]
    return x


if __name__ == "__main__":
    # Small shapes consistent with the module; B=4 so the folded grid has 2 parallel steps.
    B, S_TGT, S_SRC = 4, 8, 8
    D_MODEL, D_FF, H = 32, 64, 4

    key = jax.random.PRNGKey(0)
    ks = jax.random.split(key, 16)

    def init(k, shape, scale):
        return (scale * jax.random.normal(k, shape)).astype(jnp.float32)

    params = {
        "wq1": init(ks[0], (D_MODEL, D_MODEL), 0.1),
        "wk1": init(ks[1], (D_MODEL, D_MODEL), 0.1),
        "wv1": init(ks[2], (D_MODEL, D_MODEL), 0.1),
        "wo1": init(ks[3], (D_MODEL, D_MODEL), 0.1),
        "wq2": init(ks[4], (D_MODEL, D_MODEL), 0.1),
        "wk2": init(ks[5], (D_MODEL, D_MODEL), 0.1),
        "wv2": init(ks[6], (D_MODEL, D_MODEL), 0.1),
        "wo2": init(ks[7], (D_MODEL, D_MODEL), 0.1),
        "w1": init(ks[8], (D_MODEL, D_FF), 0.1),
        "b1": init(ks[9], (1, D_FF), 0.02),
        "w2": init(ks[10], (D_FF, D_MODEL), 0.1),
        "b2": init(ks[11], (1, D_MODEL), 0.02),
        "ln_g": jnp.ones((3, D_MODEL), jnp.float32),   # LayerNormalization alpha init
        "ln_b": jnp.zeros((3, D_MODEL), jnp.float32),  # LayerNormalization bias init
    }

    x = init(ks[12], (B, S_TGT, D_MODEL), 1.0)
    enc = init(ks[13], (B, S_SRC, D_MODEL), 1.0)
    # Source padding mask: last source position masked (value 0 => masked), shared across batch.
    src_mask = jnp.ones((1, S_SRC), jnp.float32).at[0, -1].set(0.0)
    # Causal decoder mask only needed for the reference; the kernel wrapper builds it itself.
    tgt_mask = jnp.tril(jnp.ones((S_TGT, S_TGT), jnp.float32))

    out = decoder_block(x, enc, src_mask, params, H, batch_tile=2)
    out = jax.block_until_ready(out)

    ref = decoder_block_ref(x, enc, tgt_mask, src_mask, params, H)
    assert out.shape == (B, S_TGT, D_MODEL)
    assert jnp.allclose(out, ref, atol=2e-4, rtol=2e-4), "mismatch vs reference"

    print("KERNEL_OK")
</pallas_src>

<mosaic_0001>
module attributes {stable_mosaic.version = 11 : i64} {
  func.func @_decoder_block_kernel(%arg0: i32, %arg1: memref<16x32xf32, #tpu.memory_space<vmem>>, %arg2: memref<16x32xf32, #tpu.memory_space<vmem>>, %arg3: memref<16x16xf32, #tpu.memory_space<vmem>>, %arg4: memref<16x16xf32, #tpu.memory_space<vmem>>, %arg5: memref<32x96xf32, #tpu.memory_space<vmem>>, %arg6: memref<32x32xf32, #tpu.memory_space<vmem>>, %arg7: memref<32x32xf32, #tpu.memory_space<vmem>>, %arg8: memref<32x64xf32, #tpu.memory_space<vmem>>, %arg9: memref<32x32xf32, #tpu.memory_space<vmem>>, %arg10: memref<32x64xf32, #tpu.memory_space<vmem>>, %arg11: memref<1x64xf32, #tpu.memory_space<vmem>>, %arg12: memref<64x32xf32, #tpu.memory_space<vmem>>, %arg13: memref<1x32xf32, #tpu.memory_space<vmem>>, %arg14: memref<3x32xf32, #tpu.memory_space<vmem>>, %arg15: memref<3x32xf32, #tpu.memory_space<vmem>>, %arg16: memref<16x32xf32, #tpu.memory_space<vmem>>, %arg17: memref<16x32xf32, #tpu.memory_space<vmem>>) attributes {dimension_semantics = [#tpu.dimension_semantics<parallel>], iteration_bounds = array<i64: 2>, scalar_prefetch = 0 : i64, scratch_operands = 1 : i64, tpu.core_type = #tpu.core_type<tc>, window_params = [{transform_indices = @transform_0, window_bounds = array<i64: 16, 32>}, {transform_indices = @transform_1, window_bounds = array<i64: 16, 32>}, {pipeline_mode = #tpu.pipeline_mode<synchronous>, transform_indices = @transform_2, window_bounds = array<i64: 16, 16>}, {pipeline_mode = #tpu.pipeline_mode<synchronous>, transform_indices = @transform_3, window_bounds = array<i64: 16, 16>}, {pipeline_mode = #tpu.pipeline_mode<synchronous>, transform_indices = @transform_4, window_bounds = array<i64: 32, 96>}, {pipeline_mode = #tpu.pipeline_mode<synchronous>, transform_indices = @transform_5, window_bounds = array<i64: 32, 32>}, {pipeline_mode = #tpu.pipeline_mode<synchronous>, transform_indices = @transform_6, window_bounds = array<i64: 32, 32>}, {pipeline_mode = #tpu.pipeline_mode<synchronous>, transform_indices = @transform_7, window_bounds = array<i64: 32, 64>}, {pipeline_mode = #tpu.pipeline_mode<synchronous>, transform_indices = @transform_8, window_bounds = array<i64: 32, 32>}, {pipeline_mode = #tpu.pipeline_mode<synchronous>, transform_indices = @transform_9, window_bounds = array<i64: 32, 64>}, {pipeline_mode = #tpu.pipeline_mode<synchronous>, transform_indices = @transform_10, window_bounds = array<i64: 1, 64>}, {pipeline_mode = #tpu.pipeline_mode<synchronous>, transform_indices = @transform_11, window_bounds = array<i64: 64, 32>}, {pipeline_mode = #tpu.pipeline_mode<synchronous>, transform_indices = @transform_12, window_bounds = array<i64: 1, 32>}, {pipeline_mode = #tpu.pipeline_mode<synchronous>, transform_indices = @transform_13, window_bounds = array<i64: 3, 32>}, {pipeline_mode = #tpu.pipeline_mode<synchronous>, transform_indices = @transform_14, window_bounds = array<i64: 3, 32>}, {transform_indices = @transform_15, window_bounds = array<i64: 16, 32>}]} {
    %c0 = arith.constant 0 : index
    %c0_0 = arith.constant 0 : index
    %0 = vector.load %arg1[%c0, %c0_0] : memref<16x32xf32, #tpu.memory_space<vmem>>, vector<16x32xf32>
    %c0_1 = arith.constant 0 : index
    %c0_2 = arith.constant 0 : index
    %1 = vector.load %arg2[%c0_1, %c0_2] : memref<16x32xf32, #tpu.memory_space<vmem>>, vector<16x32xf32>
    %cst = arith.constant 8.000000e+00 : f32
    %2 = math.sqrt %cst : f32
    %cst_3 = arith.constant 1.000000e+00 : f32
    %3 = arith.divf %cst_3, %2 : f32
    %c0_4 = arith.constant 0 : index
    %c0_5 = arith.constant 0 : index
    %4 = vector.load %arg14[%c0_4, %c0_5] : memref<3x32xf32, #tpu.memory_space<vmem>>, vector<1x32xf32>
    %c0_6 = arith.constant 0 : index
    %c0_7 = arith.constant 0 : index
    %5 = vector.load %arg15[%c0_6, %c0_7] : memref<3x32xf32, #tpu.memory_space<vmem>>, vector<1x32xf32>
    %cst_8 = arith.constant dense<0.000000e+00> : vector<16xf32>
    %6 = vector.multi_reduction <add>, %0, %cst_8 [1] : vector<16x32xf32> to vector<16xf32>
    %7 = vector.shape_cast %6 : vector<16xf32> to vector<16x1xf32>
    %cst_9 = arith.constant 3.200000e+01 : f32
    %8 = vector.broadcast %cst_9 : f32 to vector<16x1xf32>
    %9 = arith.divf %7, %8 : vector<16x1xf32>
    %10 = vector.broadcast %9 : vector<16x1xf32> to vector<16x32xf32>
    %11 = arith.subf %0, %10 : vector<16x32xf32>
    %12 = arith.mulf %11, %11 : vector<16x32xf32>
    %cst_10 = arith.constant dense<0.000000e+00> : vector<16xf32>
    %13 = vector.multi_reduction <add>, %12, %cst_10 [1] : vector<16x32xf32> to vector<16xf32>
    %14 = vector.shape_cast %13 : vector<16xf32> to vector<16x1xf32>
    %cst_11 = arith.constant 3.100000e+01 : f32
    %15 = vector.broadcast %cst_11 : f32 to vector<16x1xf32>
    %16 = arith.divf %14, %15 : vector<16x1xf32>
    %17 = math.sqrt %16 : vector<16x1xf32>
    %18 = vector.broadcast %9 : vector<16x1xf32> to vector<16x32xf32>
    %19 = arith.subf %0, %18 : vector<16x32xf32>
    %20 = vector.broadcast %4 : vector<1x32xf32> to vector<16x32xf32>
    %21 = arith.mulf %20, %19 : vector<16x32xf32>
    %cst_12 = arith.constant 9.99999997E-7 : f32
    %22 = vector.broadcast %cst_12 : f32 to vector<16x1xf32>
    %23 = arith.addf %17, %22 : vector<16x1xf32>
    %24 = vector.broadcast %23 : vector<16x1xf32> to vector<16x32xf32>
    %25 = arith.divf %21, %24 : vector<16x32xf32>
    %26 = vector.broadcast %5 : vector<1x32xf32> to vector<16x32xf32>
    %27 = arith.addf %25, %26 : vector<16x32xf32>
    %c0_13 = arith.constant 0 : index
    %c0_14 = arith.constant 0 : index
    %28 = vector.load %arg5[%c0_13, %c0_14] : memref<32x96xf32, #tpu.memory_space<vmem>>, vector<32x96xf32>
    %cst_15 = arith.constant dense<0.000000e+00> : vector<16x96xf32>
    %29 = tpu.matmul %27, %28, %cst_15 {dimension_numbers = #tpu.dot_dimension_numbers<[1], [0], [0], [1], [0, 0, 1, 1], [], []>} : vector<16x32xf32>, vector<32x96xf32>, vector<16x96xf32> -> vector<16x96xf32>
    %30 = vector.extract_strided_slice %29 {offsets = [0, 0], sizes = [16, 32], strides = [1, 1]} : vector<16x96xf32> to vector<16x32xf32>
    %31 = vector.extract_strided_slice %29 {offsets = [0, 32], sizes = [16, 32], strides = [1, 1]} : vector<16x96xf32> to vector<16x32xf32>
    %32 = vector.extract_strided_slice %29 {offsets = [0, 64], sizes = [16, 32], strides = [1, 1]} : vector<16x96xf32> to vector<16x32xf32>
    %c0_16 = arith.constant 0 : index
    %c0_17 = arith.constant 0 : index
    %33 = vector.load %arg3[%c0_16, %c0_17] : memref<16x16xf32, #tpu.memory_space<vmem>>, vector<16x16xf32>
    %34 = vector.extract_strided_slice %30 {offsets = [0, 0], sizes = [16, 8], strides = [1, 1]} : vector<16x32xf32> to vector<16x8xf32>
    %35 = vector.extract_strided_slice %31 {offsets = [0, 0], sizes = [16, 8], strides = [1, 1]} : vector<16x32xf32> to vector<16x8xf32>
    %36 = vector.extract_strided_slice %32 {offsets = [0, 0], sizes = [16, 8], strides = [1, 1]} : vector<16x32xf32> to vector<16x8xf32>
    %cst_18 = arith.constant dense<0.000000e+00> : vector<16x16xf32>
    %37 = tpu.matmul %34, %35, %cst_18 {dimension_numbers = #tpu.dot_dimension_numbers<[1], [1], [0], [0], [0, 0, 1, 0], [], []>} : vector<16x8xf32>, vector<16x8xf32>, vector<16x16xf32> -> vector<16x16xf32>
    %38 = vector.broadcast %3 : f32 to vector<16x16xf32>
    %39 = arith.mulf %37, %38 : vector<16x16xf32>
    %40 = arith.addf %39, %33 : vector<16x16xf32>
    %cst_19 = arith.constant dense<0xFF800000> : vector<16xf32>
    %41 = vector.multi_reduction <maximumf>, %40, %cst_19 [1] : vector<16x16xf32> to vector<16xf32>
    %42 = vector.shape_cast %41 : vector<16xf32> to vector<16x1xf32>
    %43 = vector.broadcast %42 : vector<16x1xf32> to vector<16x16xf32>
    %44 = arith.subf %40, %43 : vector<16x16xf32>
    %45 = math.exp %44 : vector<16x16xf32>
    %cst_20 = arith.constant dense<0.000000e+00> : vector<16xf32>
    %46 = vector.multi_reduction <add>, %45, %cst_20 [1] : vector<16x16xf32> to vector<16xf32>
    %47 = vector.shape_cast %46 : vector<16xf32> to vector<16x1xf32>
    %cst_21 = arith.constant dense<0.000000e+00> : vector<16x8xf32>
    %48 = tpu.matmul %45, %36, %cst_21 {dimension_numbers = #tpu.dot_dimension_numbers<[1], [0], [0], [1], [0, 0, 1, 1], [], []>} : vector<16x16xf32>, vector<16x8xf32>, vector<16x8xf32> -> vector<16x8xf32>
    %49 = vector.broadcast %47 : vector<16x1xf32> to vector<16x8xf32>
    %50 = arith.divf %48, %49 : vector<16x8xf32>
    %c0_22 = arith.constant 0 : index
    %c0_23 = arith.constant 0 : index
    %51 = vector.load %arg17[%c0_22, %c0_23] : memref<16x32xf32, #tpu.memory_space<vmem>>, vector<16x8xf32>
    tpu.vector_store %arg17[%c0_22, %c0_23], %50 {strides = array<i32>} : memref<16x32xf32, #tpu.memory_space<vmem>>, vector<16x8xf32>,
    %52 = vector.extract_strided_slice %30 {offsets = [0, 8], sizes = [16, 8], strides = [1, 1]} : vector<16x32xf32> to vector<16x8xf32>
    %53 = vector.extract_strided_slice %31 {offsets = [0, 8], sizes = [16, 8], strides = [1, 1]} : vector<16x32xf32> to vector<16x8xf32>
    %54 = vector.extract_strided_slice %32 {offsets = [0, 8], sizes = [16, 8], strides = [1, 1]} : vector<16x32xf32> to vector<16x8xf32>
    %cst_24 = arith.constant dense<0.000000e+00> : vector<16x16xf32>
    %55 = tpu.matmul %52, %53, %cst_24 {dimension_numbers = #tpu.dot_dimension_numbers<[1], [1], [0], [0], [0, 0, 1, 0], [], []>} : vector<16x8xf32>, vector<16x8xf32>, vector<16x16xf32> -> vector<16x16xf32>
    %56 = vector.broadcast %3 : f32 to vector<16x16xf32>
    %57 = arith.mulf %55, %56 : vector<16x16xf32>
    %58 = arith.addf %57, %33 : vector<16x16xf32>
    %cst_25 = arith.constant dense<0xFF800000> : vector<16xf32>
    %59 = vector.multi_reduction <maximumf>, %58, %cst_25 [1] : vector<16x16xf32> to vector<16xf32>
    %60 = vector.shape_cast %59 : vector<16xf32> to vector<16x1xf32>
    %61 = vector.broadcast %60 : vector<16x1xf32> to vector<16x16xf32>
    %62 = arith.subf %58, %61 : vector<16x16xf32>
    %63 = math.exp %62 : vector<16x16xf32>
    %cst_26 = arith.constant dense<0.000000e+00> : vector<16xf32>
    %64 = vector.multi_reduction <add>, %63, %cst_26 [1] : vector<16x16xf32> to vector<16xf32>
    %65 = vector.shape_cast %64 : vector<16xf32> to vector<16x1xf32>
    %cst_27 = arith.constant dense<0.000000e+00> : vector<16x8xf32>
    %66 = tpu.matmul %63, %54, %cst_27 {dimension_numbers = #tpu.dot_dimension_numbers<[1], [0], [0], [1], [0, 0, 1, 1], [], []>} : vector<16x16xf32>, vector<16x8xf32>, vector<16x8xf32> -> vector<16x8xf32>
    %67 = vector.broadcast %65 : vector<16x1xf32> to vector<16x8xf32>
    %68 = arith.divf %66, %67 : vector<16x8xf32>
    %c0_28 = arith.constant 0 : index
    %c8 = arith.constant 8 : index
    %69 = vector.load %arg17[%c0_28, %c8] : memref<16x32xf32, #tpu.memory_space<vmem>>, vector<16x8xf32>
    tpu.vector_store %arg17[%c0_28, %c8], %68 {strides = array<i32>} : memref<16x32xf32, #tpu.memory_space<vmem>>, vector<16x8xf32>,
    %70 = vector.extract_strided_slice %30 {offsets = [0, 16], sizes = [16, 8], strides = [1, 1]} : vector<16x32xf32> to vector<16x8xf32>
    %71 = vector.extract_strided_slice %31 {offsets = [0, 16], sizes = [16, 8], strides = [1, 1]} : vector<16x32xf32> to vector<16x8xf32>
    %72 = vector.extract_strided_slice %32 {offsets = [0, 16], sizes = [16, 8], strides = [1, 1]} : vector<16x32xf32> to vector<16x8xf32>
    %cst_29 = arith.constant dense<0.000000e+00> : vector<16x16xf32>
    %73 = tpu.matmul %70, %71, %cst_29 {dimension_numbers = #tpu.dot_dimension_numbers<[1], [1], [0], [0], [0, 0, 1, 0], [], []>} : vector<16x8xf32>, vector<16x8xf32>, vector<16x16xf32> -> vector<16x16xf32>
    %74 = vector.broadcast %3 : f32 to vector<16x16xf32>
    %75 = arith.mulf %73, %74 : vector<16x16xf32>
    %76 = arith.addf %75, %33 : vector<16x16xf32>
    %cst_30 = arith.constant dense<0xFF800000> : vector<16xf32>
    %77 = vector.multi_reduction <maximumf>, %76, %cst_30 [1] : vector<16x16xf32> to vector<16xf32>
    %78 = vector.shape_cast %77 : vector<16xf32> to vector<16x1xf32>
    %79 = vector.broadcast %78 : vector<16x1xf32> to vector<16x16xf32>
    %80 = arith.subf %76, %79 : vector<16x16xf32>
    %81 = math.exp %80 : vector<16x16xf32>
    %cst_31 = arith.constant dense<0.000000e+00> : vector<16xf32>
    %82 = vector.multi_reduction <add>, %81, %cst_31 [1] : vector<16x16xf32> to vector<16xf32>
    %83 = vector.shape_cast %82 : vector<16xf32> to vector<16x1xf32>
    %cst_32 = arith.constant dense<0.000000e+00> : vector<16x8xf32>
    %84 = tpu.matmul %81, %72, %cst_32 {dimension_numbers = #tpu.dot_dimension_numbers<[1], [0], [0], [1], [0, 0, 1, 1], [], []>} : vector<16x16xf32>, vector<16x8xf32>, vector<16x8xf32> -> vector<16x8xf32>
    %85 = vector.broadcast %83 : vector<16x1xf32> to vector<16x8xf32>
    %86 = arith.divf %84, %85 : vector<16x8xf32>
    %c0_33 = arith.constant 0 : index
    %c16 = arith.constant 16 : index
    %87 = vector.load %arg17[%c0_33, %c16] : memref<16x32xf32, #tpu.memory_space<vmem>>, vector<16x8xf32>
    tpu.vector_store %arg17[%c0_33, %c16], %86 {strides = array<i32>} : memref<16x32xf32, #tpu.memory_space<vmem>>, vector<16x8xf32>,
    %88 = vector.extract_strided_slice %30 {offsets = [0, 24], sizes = [16, 8], strides = [1, 1]} : vector<16x32xf32> to vector<16x8xf32>
    %89 = vector.extract_strided_slice %31 {offsets = [0, 24], sizes = [16, 8], strides = [1, 1]} : vector<16x32xf32> to vector<16x8xf32>
    %90 = vector.extract_strided_slice %32 {offsets = [0, 24], sizes = [16, 8], strides = [1, 1]} : vector<16x32xf32> to vector<16x8xf32>
    %cst_34 = arith.constant dense<0.000000e+00> : vector<16x16xf32>
    %91 = tpu.matmul %88, %89, %cst_34 {dimension_numbers = #tpu.dot_dimension_numbers<[1], [1], [0], [0], [0, 0, 1, 0], [], []>} : vector<16x8xf32>, vector<16x8xf32>, vector<16x16xf32> -> vector<16x16xf32>
    %92 = vector.broadcast %3 : f32 to vector<16x16xf32>
    %93 = arith.mulf %91, %92 : vector<16x16xf32>
    %94 = arith.addf %93, %33 : vector<16x16xf32>
    %cst_35 = arith.constant dense<0xFF800000> : vector<16xf32>
    %95 = vector.multi_reduction <maximumf>, %94, %cst_35 [1] : vector<16x16xf32> to vector<16xf32>
    %96 = vector.shape_cast %95 : vector<16xf32> to vector<16x1xf32>
    %97 = vector.broadcast %96 : vector<16x1xf32> to vector<16x16xf32>
    %98 = arith.subf %94, %97 : vector<16x16xf32>
    %99 = math.exp %98 : vector<16x16xf32>
    %cst_36 = arith.constant dense<0.000000e+00> : vector<16xf32>
    %100 = vector.multi_reduction <add>, %99, %cst_36 [1] : vector<16x16xf32> to vector<16xf32>
    %101 = vector.shape_cast %100 : vector<16xf32> to vector<16x1xf32>
    %cst_37 = arith.constant dense<0.000000e+00> : vector<16x8xf32>
    %102 = tpu.matmul %99, %90, %cst_37 {dimension_numbers = #tpu.dot_dimension_numbers<[1], [0], [0], [1], [0, 0, 1, 1], [], []>} : vector<16x16xf32>, vector<16x8xf32>, vector<16x8xf32> -> vector<16x8xf32>
    %103 = vector.broadcast %101 : vector<16x1xf32> to vector<16x8xf32>
    %104 = arith.divf %102, %103 : vector<16x8xf32>
    %c0_38 = arith.constant 0 : index
    %c24 = arith.constant 24 : index
    %105 = vector.load %arg17[%c0_38, %c24] : memref<16x32xf32, #tpu.memory_space<vmem>>, vector<16x8xf32>
    tpu.vector_store %arg17[%c0_38, %c24], %104 {strides = array<i32>} : memref<16x32xf32, #tpu.memory_space<vmem>>, vector<16x8xf32>,
    %c0_39 = arith.constant 0 : index
    %c0_40 = arith.constant 0 : index
    %106 = vector.load %arg17[%c0_39, %c0_40] : memref<16x32xf32, #tpu.memory_space<vmem>>, vector<16x32xf32>
    %c0_41 = arith.constant 0 : index
    %c0_42 = arith.constant 0 : index
    %107 = vector.load %arg6[%c0_41, %c0_42] : memref<32x32xf32, #tpu.memory_space<vmem>>, vector<32x32xf32>
    %cst_43 = arith.constant dense<0.000000e+00> : vector<16x32xf32>
    %108 = tpu.matmul %106, %107, %cst_43 {dimension_numbers = #tpu.dot_dimension_numbers<[1], [0], [0], [1], [0, 0, 1, 1], [], []>} : vector<16x32xf32>, vector<32x32xf32>, vector<16x32xf32> -> vector<16x32xf32>
    %109 = arith.addf %0, %108 : vector<16x32xf32>
    %c1 = arith.constant 1 : index
    %c0_44 = arith.constant 0 : index
    %110 = vector.load %arg14[%c1, %c0_44] : memref<3x32xf32, #tpu.memory_space<vmem>>, vector<1x32xf32>
    %c1_45 = arith.constant 1 : index
    %c0_46 = arith.constant 0 : index
    %111 = vector.load %arg15[%c1_45, %c0_46] : memref<3x32xf32, #tpu.memory_space<vmem>>, vector<1x32xf32>
    %cst_47 = arith.constant dense<0.000000e+00> : vector<16xf32>
    %112 = vector.multi_reduction <add>, %109, %cst_47 [1] : vector<16x32xf32> to vector<16xf32>
    %113 = vector.shape_cast %112 : vector<16xf32> to vector<16x1xf32>
    %cst_48 = arith.constant 3.200000e+01 : f32
    %114 = vector.broadcast %cst_48 : f32 to vector<16x1xf32>
    %115 = arith.divf %113, %114 : vector<16x1xf32>
    %116 = vector.broadcast %115 : vector<16x1xf32> to vector<16x32xf32>
    %117 = arith.subf %109, %116 : vector<16x32xf32>
    %118 = arith.mulf %117, %117 : vector<16x32xf32>
    %cst_49 = arith.constant dense<0.000000e+00> : vector<16xf32>
    %119 = vector.multi_reduction <add>, %118, %cst_49 [1] : vector<16x32xf32> to vector<16xf32>
    %120 = vector.shape_cast %119 : vector<16xf32> to vector<16x1xf32>
    %cst_50 = arith.constant 3.100000e+01 : f32
    %121 = vector.broadcast %cst_50 : f32 to vector<16x1xf32>
    %122 = arith.divf %120, %121 : vector<16x1xf32>
    %123 = math.sqrt %122 : vector<16x1xf32>
    %124 = vector.broadcast %115 : vector<16x1xf32> to vector<16x32xf32>
    %125 = arith.subf %109, %124 : vector<16x32xf32>
    %126 = vector.broadcast %110 : vector<1x32xf32> to vector<16x32xf32>
    %127 = arith.mulf %126, %125 : vector<16x32xf32>
    %cst_51 = arith.constant 9.99999997E-7 : f32
    %128 = vector.broadcast %cst_51 : f32 to vector<16x1xf32>
    %129 = arith.addf %123, %128 : vector<16x1xf32>
    %130 = vector.broadcast %129 : vector<16x1xf32> to vector<16x32xf32>
    %131 = arith.divf %127, %130 : vector<16x32xf32>
    %132 = vector.broadcast %111 : vector<1x32xf32> to vector<16x32xf32>
    %133 = arith.addf %131, %132 : vector<16x32xf32>
    %c0_52 = arith.constant 0 : index
    %c0_53 = arith.constant 0 : index
    %134 = vector.load %arg7[%c0_52, %c0_53] : memref<32x32xf32, #tpu.memory_space<vmem>>, vector<32x32xf32>
    %cst_54 = arith.constant dense<0.000000e+00> : vector<16x32xf32>
    %135 = tpu.matmul %133, %134, %cst_54 {dimension_numbers = #tpu.dot_dimension_numbers<[1], [0], [0], [1], [0, 0, 1, 1], [], []>} : vector<16x32xf32>, vector<32x32xf32>, vector<16x32xf32> -> vector<16x32xf32>
    %c0_55 = arith.constant 0 : index
    %c0_56 = arith.constant 0 : index
    %136 = vector.load %arg8[%c0_55, %c0_56] : memref<32x64xf32, #tpu.memory_space<vmem>>, vector<32x64xf32>
    %cst_57 = arith.constant dense<0.000000e+00> : vector<16x64xf32>
    %137 = tpu.matmul %1, %136, %cst_57 {dimension_numbers = #tpu.dot_dimension_numbers<[1], [0], [0], [1], [0, 0, 1, 1], [], []>} : vector<16x32xf32>, vector<32x64xf32>, vector<16x64xf32> -> vector<16x64xf32>
    %138 = vector.extract_strided_slice %137 {offsets = [0, 0], sizes = [16, 32], strides = [1, 1]} : vector<16x64xf32> to vector<16x32xf32>
    %139 = vector.extract_strided_slice %137 {offsets = [0, 32], sizes = [16, 32], strides = [1, 1]} : vector<16x64xf32> to vector<16x32xf32>
    %c0_58 = arith.constant 0 : index
    %c0_59 = arith.constant 0 : index
    %140 = vector.load %arg4[%c0_58, %c0_59] : memref<16x16xf32, #tpu.memory_space<vmem>>, vector<16x16xf32>
    %141 = vector.extract_strided_slice %135 {offsets = [0, 0], sizes = [16, 8], strides = [1, 1]} : vector<16x32xf32> to vector<16x8xf32>
    %142 = vector.extract_strided_slice %138 {offsets = [0, 0], sizes = [16, 8], strides = [1, 1]} : vector<16x32xf32> to vector<16x8xf32>
    %143 = vector.extract_strided_slice %139 {offsets = [0, 0], sizes = [16, 8], strides = [1, 1]} : vector<16x32xf32> to vector<16x8xf32>
    %cst_60 = arith.constant dense<0.000000e+00> : vector<16x16xf32>
    %144 = tpu.matmul %141, %142, %cst_60 {dimension_numbers = #tpu.dot_dimension_numbers<[1], [1], [0], [0], [0, 0, 1, 0], [], []>} : vector<16x8xf32>, vector<16x8xf32>, vector<16x16xf32> -> vector<16x16xf32>
    %145 = vector.broadcast %3 : f32 to vector<16x16xf32>
    %146 = arith.mulf %144, %145 : vector<16x16xf32>
    %147 = arith.addf %146, %140 : vector<16x16xf32>
    %cst_61 = arith.constant dense<0xFF800000> : vector<16xf32>
    %148 = vector.multi_reduction <maximumf>, %147, %cst_61 [1] : vector<16x16xf32> to vector<16xf32>
    %149 = vector.shape_cast %148 : vector<16xf32> to vector<16x1xf32>
    %150 = vector.broadcast %149 : vector<16x1xf32> to vector<16x16xf32>
    %151 = arith.subf %147, %150 : vector<16x16xf32>
    %152 = math.exp %151 : vector<16x16xf32>
    %cst_62 = arith.constant dense<0.000000e+00> : vector<16xf32>
    %153 = vector.multi_reduction <add>, %152, %cst_62 [1] : vector<16x16xf32> to vector<16xf32>
    %154 = vector.shape_cast %153 : vector<16xf32> to vector<16x1xf32>
    %cst_63 = arith.constant dense<0.000000e+00> : vector<16x8xf32>
    %155 = tpu.matmul %152, %143, %cst_63 {dimension_numbers = #tpu.dot_dimension_numbers<[1], [0], [0], [1], [0, 0, 1, 1], [], []>} : vector<16x16xf32>, vector<16x8xf32>, vector<16x8xf32> -> vector<16x8xf32>
    %156 = vector.broadcast %154 : vector<16x1xf32> to vector<16x8xf32>
    %157 = arith.divf %155, %156 : vector<16x8xf32>
    %c0_64 = arith.constant 0 : index
    %c0_65 = arith.constant 0 : index
    %158 = vector.load %arg17[%c0_64, %c0_65] : memref<16x32xf32, #tpu.memory_space<vmem>>, vector<16x8xf32>
    tpu.vector_store %arg17[%c0_64, %c0_65], %157 {strides = array<i32>} : memref<16x32xf32, #tpu.memory_space<vmem>>, vector<16x8xf32>,
    %159 = vector.extract_strided_slice %135 {offsets = [0, 8], sizes = [16, 8], strides = [1, 1]} : vector<16x32xf32> to vector<16x8xf32>
    %160 = vector.extract_strided_slice %138 {offsets = [0, 8], sizes = [16, 8], strides = [1, 1]} : vector<16x32xf32> to vector<16x8xf32>
    %161 = vector.extract_strided_slice %139 {offsets = [0, 8], sizes = [16, 8], strides = [1, 1]} : vector<16x32xf32> to vector<16x8xf32>
    %cst_66 = arith.constant dense<0.000000e+00> : vector<16x16xf32>
    %162 = tpu.matmul %159, %160, %cst_66 {dimension_numbers = #tpu.dot_dimension_numbers<[1], [1], [0], [0], [0, 0, 1, 0], [], []>} : vector<16x8xf32>, vector<16x8xf32>, vector<16x16xf32> -> vector<16x16xf32>
    %163 = vector.broadcast %3 : f32 to vector<16x16xf32>
    %164 = arith.mulf %162, %163 : vector<16x16xf32>
    %165 = arith.addf %164, %140 : vector<16x16xf32>
    %cst_67 = arith.constant dense<0xFF800000> : vector<16xf32>
    %166 = vector.multi_reduction <maximumf>, %165, %cst_67 [1] : vector<16x16xf32> to vector<16xf32>
    %167 = vector.shape_cast %166 : vector<16xf32> to vector<16x1xf32>
    %168 = vector.broadcast %167 : vector<16x1xf32> to vector<16x16xf32>
    %169 = arith.subf %165, %168 : vector<16x16xf32>
    %170 = math.exp %169 : vector<16x16xf32>
    %cst_68 = arith.constant dense<0.000000e+00> : vector<16xf32>
    %171 = vector.multi_reduction <add>, %170, %cst_68 [1] : vector<16x16xf32> to vector<16xf32>
    %172 = vector.shape_cast %171 : vector<16xf32> to vector<16x1xf32>
    %cst_69 = arith.constant dense<0.000000e+00> : vector<16x8xf32>
    %173 = tpu.matmul %170, %161, %cst_69 {dimension_numbers = #tpu.dot_dimension_numbers<[1], [0], [0], [1], [0, 0, 1, 1], [], []>} : vector<16x16xf32>, vector<16x8xf32>, vector<16x8xf32> -> vector<16x8xf32>
    %174 = vector.broadcast %172 : vector<16x1xf32> to vector<16x8xf32>
    %175 = arith.divf %173, %174 : vector<16x8xf32>
    %c0_70 = arith.constant 0 : index
    %c8_71 = arith.constant 8 : index
    %176 = vector.load %arg17[%c0_70, %c8_71] : memref<16x32xf32, #tpu.memory_space<vmem>>, vector<16x8xf32>
    tpu.vector_store %arg17[%c0_70, %c8_71], %175 {strides = array<i32>} : memref<16x32xf32, #tpu.memory_space<vmem>>, vector<16x8xf32>,
    %177 = vector.extract_strided_slice %135 {offsets = [0, 16], sizes = [16, 8], strides = [1, 1]} : vector<16x32xf32> to vector<16x8xf32>
    %178 = vector.extract_strided_slice %138 {offsets = [0, 16], sizes = [16, 8], strides = [1, 1]} : vector<16x32xf32> to vector<16x8xf32>
    %179 = vector.extract_strided_slice %139 {offsets = [0, 16], sizes = [16, 8], strides = [1, 1]} : vector<16x32xf32> to vector<16x8xf32>
    %cst_72 = arith.constant dense<0.000000e+00> : vector<16x16xf32>
    %180 = tpu.matmul %177, %178, %cst_72 {dimension_numbers = #tpu.dot_dimension_numbers<[1], [1], [0], [0], [0, 0, 1, 0], [], []>} : vector<16x8xf32>, vector<16x8xf32>, vector<16x16xf32> -> vector<16x16xf32>
    %181 = vector.broadcast %3 : f32 to vector<16x16xf32>
    %182 = arith.mulf %180, %181 : vector<16x16xf32>
    %183 = arith.addf %182, %140 : vector<16x16xf32>
    %cst_73 = arith.constant dense<0xFF800000> : vector<16xf32>
    %184 = vector.multi_reduction <maximumf>, %183, %cst_73 [1] : vector<16x16xf32> to vector<16xf32>
    %185 = vector.shape_cast %184 : vector<16xf32> to vector<16x1xf32>
    %186 = vector.broadcast %185 : vector<16x1xf32> to vector<16x16xf32>
    %187 = arith.subf %183, %186 : vector<16x16xf32>
    %188 = math.exp %187 : vector<16x16xf32>
    %cst_74 = arith.constant dense<0.000000e+00> : vector<16xf32>
    %189 = vector.multi_reduction <add>, %188, %cst_74 [1] : vector<16x16xf32> to vector<16xf32>
    %190 = vector.shape_cast %189 : vector<16xf32> to vector<16x1xf32>
    %cst_75 = arith.constant dense<0.000000e+00> : vector<16x8xf32>
    %191 = tpu.matmul %188, %179, %cst_75 {dimension_numbers = #tpu.dot_dimension_numbers<[1], [0], [0], [1], [0, 0, 1, 1], [], []>} : vector<16x16xf32>, vector<16x8xf32>, vector<16x8xf32> -> vector<16x8xf32>
    %192 = vector.broadcast %190 : vector<16x1xf32> to vector<16x8xf32>
    %193 = arith.divf %191, %192 : vector<16x8xf32>
    %c0_76 = arith.constant 0 : index
    %c16_77 = arith.constant 16 : index
    %194 = vector.load %arg17[%c0_76, %c16_77] : memref<16x32xf32, #tpu.memory_space<vmem>>, vector<16x8xf32>
    tpu.vector_store %arg17[%c0_76, %c16_77], %193 {strides = array<i32>} : memref<16x32xf32, #tpu.memory_space<vmem>>, vector<16x8xf32>,
    %195 = vector.extract_strided_slice %135 {offsets = [0, 24], sizes = [16, 8], strides = [1, 1]} : vector<16x32xf32> to vector<16x8xf32>
    %196 = vector.extract_strided_slice %138 {offsets = [0, 24], sizes = [16, 8], strides = [1, 1]} : vector<16x32xf32> to vector<16x8xf32>
    %197 = vector.extract_strided_slice %139 {offsets = [0, 24], sizes = [16, 8], strides = [1, 1]} : vector<16x32xf32> to vector<16x8xf32>
    %cst_78 = arith.constant dense<0.000000e+00> : vector<16x16xf32>
    %198 = tpu.matmul %195, %196, %cst_78 {dimension_numbers = #tpu.dot_dimension_numbers<[1], [1], [0], [0], [0, 0, 1, 0], [], []>} : vector<16x8xf32>, vector<16x8xf32>, vector<16x16xf32> -> vector<16x16xf32>
    %199 = vector.broadcast %3 : f32 to vector<16x16xf32>
    %200 = arith.mulf %198, %199 : vector<16x16xf32>
    %201 = arith.addf %200, %140 : vector<16x16xf32>
    %cst_79 = arith.constant dense<0xFF800000> : vector<16xf32>
    %202 = vector.multi_reduction <maximumf>, %201, %cst_79 [1] : vector<16x16xf32> to vector<16xf32>
    %203 = vector.shape_cast %202 : vector<16xf32> to vector<16x1xf32>
    %204 = vector.broadcast %203 : vector<16x1xf32> to vector<16x16xf32>
    %205 = arith.subf %201, %204 : vector<16x16xf32>
    %206 = math.exp %205 : vector<16x16xf32>
    %cst_80 = arith.constant dense<0.000000e+00> : vector<16xf32>
    %207 = vector.multi_reduction <add>, %206, %cst_80 [1] : vector<16x16xf32> to vector<16xf32>
    %208 = vector.shape_cast %207 : vector<16xf32> to vector<16x1xf32>
    %cst_81 = arith.constant dense<0.000000e+00> : vector<16x8xf32>
    %209 = tpu.matmul %206, %197, %cst_81 {dimension_numbers = #tpu.dot_dimension_numbers<[1], [0], [0], [1], [0, 0, 1, 1], [], []>} : vector<16x16xf32>, vector<16x8xf32>, vector<16x8xf32> -> vector<16x8xf32>
    %210 = vector.broadcast %208 : vector<16x1xf32> to vector<16x8xf32>
    %211 = arith.divf %209, %210 : vector<16x8xf32>
    %c0_82 = arith.constant 0 : index
    %c24_83 = arith.constant 24 : index
    %212 = vector.load %arg17[%c0_82, %c24_83] : memref<16x32xf32, #tpu.memory_space<vmem>>, vector<16x8xf32>
    tpu.vector_store %arg17[%c0_82, %c24_83], %211 {strides = array<i32>} : memref<16x32xf32, #tpu.memory_space<vmem>>, vector<16x8xf32>,
    %c0_84 = arith.constant 0 : index
    %c0_85 = arith.constant 0 : index
    %213 = vector.load %arg17[%c0_84, %c0_85] : memref<16x32xf32, #tpu.memory_space<vmem>>, vector<16x32xf32>
    %c0_86 = arith.constant 0 : index
    %c0_87 = arith.constant 0 : index
    %214 = vector.load %arg9[%c0_86, %c0_87] : memref<32x32xf32, #tpu.memory_space<vmem>>, vector<32x32xf32>
    %cst_88 = arith.constant dense<0.000000e+00> : vector<16x32xf32>
    %215 = tpu.matmul %213, %214, %cst_88 {dimension_numbers = #tpu.dot_dimension_numbers<[1], [0], [0], [1], [0, 0, 1, 1], [], []>} : vector<16x32xf32>, vector<32x32xf32>, vector<16x32xf32> -> vector<16x32xf32>
    %216 = arith.addf %109, %215 : vector<16x32xf32>
    %c2 = arith.constant 2 : index
    %c0_89 = arith.constant 0 : index
    %217 = vector.load %arg14[%c2, %c0_89] : memref<3x32xf32, #tpu.memory_space<vmem>>, vector<1x32xf32>
    %c2_90 = arith.constant 2 : index
    %c0_91 = arith.constant 0 : index
    %218 = vector.load %arg15[%c2_90, %c0_91] : memref<3x32xf32, #tpu.memory_space<vmem>>, vector<1x32xf32>
    %cst_92 = arith.constant dense<0.000000e+00> : vector<16xf32>
    %219 = vector.multi_reduction <add>, %216, %cst_92 [1] : vector<16x32xf32> to vector<16xf32>
    %220 = vector.shape_cast %219 : vector<16xf32> to vector<16x1xf32>
    %cst_93 = arith.constant 3.200000e+01 : f32
    %221 = vector.broadcast %cst_93 : f32 to vector<16x1xf32>
    %222 = arith.divf %220, %221 : vector<16x1xf32>
    %223 = vector.broadcast %222 : vector<16x1xf32> to vector<16x32xf32>
    %224 = arith.subf %216, %223 : vector<16x32xf32>
    %225 = arith.mulf %224, %224 : vector<16x32xf32>
    %cst_94 = arith.constant dense<0.000000e+00> : vector<16xf32>
    %226 = vector.multi_reduction <add>, %225, %cst_94 [1] : vector<16x32xf32> to vector<16xf32>
    %227 = vector.shape_cast %226 : vector<16xf32> to vector<16x1xf32>
    %cst_95 = arith.constant 3.100000e+01 : f32
    %228 = vector.broadcast %cst_95 : f32 to vector<16x1xf32>
    %229 = arith.divf %227, %228 : vector<16x1xf32>
    %230 = math.sqrt %229 : vector<16x1xf32>
    %231 = vector.broadcast %222 : vector<16x1xf32> to vector<16x32xf32>
    %232 = arith.subf %216, %231 : vector<16x32xf32>
    %233 = vector.broadcast %217 : vector<1x32xf32> to vector<16x32xf32>
    %234 = arith.mulf %233, %232 : vector<16x32xf32>
    %cst_96 = arith.constant 9.99999997E-7 : f32
    %235 = vector.broadcast %cst_96 : f32 to vector<16x1xf32>
    %236 = arith.addf %230, %235 : vector<16x1xf32>
    %237 = vector.broadcast %236 : vector<16x1xf32> to vector<16x32xf32>
    %238 = arith.divf %234, %237 : vector<16x32xf32>
    %239 = vector.broadcast %218 : vector<1x32xf32> to vector<16x32xf32>
    %240 = arith.addf %238, %239 : vector<16x32xf32>
    %c0_97 = arith.constant 0 : index
    %c0_98 = arith.constant 0 : index
    %241 = vector.load %arg10[%c0_97, %c0_98] : memref<32x64xf32, #tpu.memory_space<vmem>>, vector<32x64xf32>
    %cst_99 = arith.constant dense<0.000000e+00> : vector<16x64xf32>
    %242 = tpu.matmul %240, %241, %cst_99 {dimension_numbers = #tpu.dot_dimension_numbers<[1], [0], [0], [1], [0, 0, 1, 1], [], []>} : vector<16x32xf32>, vector<32x64xf32>, vector<16x64xf32> -> vector<16x64xf32>
    %c0_100 = arith.constant 0 : index
    %c0_101 = arith.constant 0 : index
    %243 = vector.load %arg11[%c0_100, %c0_101] : memref<1x64xf32, #tpu.memory_space<vmem>>, vector<1x64xf32>
    %244 = vector.broadcast %243 : vector<1x64xf32> to vector<16x64xf32>
    %245 = arith.addf %242, %244 : vector<16x64xf32>
    %cst_102 = arith.constant 0.000000e+00 : f32
    %246 = vector.broadcast %cst_102 : f32 to vector<16x64xf32>
    %247 = arith.maximumf %245, %246 : vector<16x64xf32>
    %c0_103 = arith.constant 0 : index
    %c0_104 = arith.constant 0 : index
    %248 = vector.load %arg12[%c0_103, %c0_104] : memref<64x32xf32, #tpu.memory_space<vmem>>, vector<64x32xf32>
    %cst_105 = arith.constant dense<0.000000e+00> : vector<16x32xf32>
    %249 = tpu.matmul %247, %248, %cst_105 {dimension_numbers = #tpu.dot_dimension_numbers<[1], [0], [0], [1], [0, 0, 1, 1], [], []>} : vector<16x64xf32>, vector<64x32xf32>, vector<16x32xf32> -> vector<16x32xf32>
    %250 = arith.addf %216, %249 : vector<16x32xf32>
    %c0_106 = arith.constant 0 : index
    %c0_107 = arith.constant 0 : index
    %251 = vector.load %arg13[%c0_106, %c0_107] : memref<1x32xf32, #tpu.memory_space<vmem>>, vector<1x32xf32>
    %252 = vector.broadcast %251 : vector<1x32xf32> to vector<16x32xf32>
    %253 = arith.addf %250, %252 : vector<16x32xf32>
    %c0_108 = arith.constant 0 : index
    %c0_109 = arith.constant 0 : index
    %254 = vector.load %arg16[%c0_108, %c0_109] : memref<16x32xf32, #tpu.memory_space<vmem>>, vector<16x32xf32>
    tpu.vector_store %arg16[%c0_108, %c0_109], %253 {strides = array<i32>} : memref<16x32xf32, #tpu.memory_space<vmem>>, vector<16x32xf32>,
    return
  }
  func.func @transform_0(%arg0: i32) -> (i32, i32) {
    %c0_i32 = arith.constant 0 : i32
    %c0_i32_0 = arith.constant 0 : i32
    return %arg0, %c0_i32 : i32, i32
  }
  func.func @transform_1(%arg0: i32) -> (i32, i32) {
    %c0_i32 = arith.constant 0 : i32
    %c0_i32_0 = arith.constant 0 : i32
    return %arg0, %c0_i32 : i32, i32
  }
  func.func @transform_2(%arg0: i32) -> (i32, i32) {
    %c0_i32 = arith.constant 0 : i32
    %c0_i32_0 = arith.constant 0 : i32
    %c0_i32_1 = arith.constant 0 : i32
    return %c0_i32, %c0_i32_0 : i32, i32
  }
  func.func @transform_3(%arg0: i32) -> (i32, i32) {
    %c0_i32 = arith.constant 0 : i32
    %c0_i32_0 = arith.constant 0 : i32
    %c0_i32_1 = arith.constant 0 : i32
    return %c0_i32, %c0_i32_0 : i32, i32
  }
  func.func @transform_4(%arg0: i32) -> (i32, i32) {
    %c0_i32 = arith.constant 0 : i32
    %c0_i32_0 = arith.constant 0 : i32
    %c0_i32_1 = arith.constant 0 : i32
    return %c0_i32, %c0_i32_0 : i32, i32
  }
  func.func @transform_5(%arg0: i32) -> (i32, i32) {
    %c0_i32 = arith.constant 0 : i32
    %c0_i32_0 = arith.constant 0 : i32
    %c0_i32_1 = arith.constant 0 : i32
    return %c0_i32, %c0_i32_0 : i32, i32
  }
  func.func @transform_6(%arg0: i32) -> (i32, i32) {
    %c0_i32 = arith.constant 0 : i32
    %c0_i32_0 = arith.constant 0 : i32
    %c0_i32_1 = arith.constant 0 : i32
    return %c0_i32, %c0_i32_0 : i32, i32
  }
  func.func @transform_7(%arg0: i32) -> (i32, i32) {
    %c0_i32 = arith.constant 0 : i32
    %c0_i32_0 = arith.constant 0 : i32
    %c0_i32_1 = arith.constant 0 : i32
    return %c0_i32, %c0_i32_0 : i32, i32
  }
  func.func @transform_8(%arg0: i32) -> (i32, i32) {
    %c0_i32 = arith.constant 0 : i32
    %c0_i32_0 = arith.constant 0 : i32
    %c0_i32_1 = arith.constant 0 : i32
    return %c0_i32, %c0_i32_0 : i32, i32
  }
  func.func @transform_9(%arg0: i32) -> (i32, i32) {
    %c0_i32 = arith.constant 0 : i32
    %c0_i32_0 = arith.constant 0 : i32
    %c0_i32_1 = arith.constant 0 : i32
    return %c0_i32, %c0_i32_0 : i32, i32
  }
  func.func @transform_10(%arg0: i32) -> (i32, i32) {
    %c0_i32 = arith.constant 0 : i32
    %c0_i32_0 = arith.constant 0 : i32
    %c0_i32_1 = arith.constant 0 : i32
    return %c0_i32, %c0_i32_0 : i32, i32
  }
  func.func @transform_11(%arg0: i32) -> (i32, i32) {
    %c0_i32 = arith.constant 0 : i32
    %c0_i32_0 = arith.constant 0 : i32
    %c0_i32_1 = arith.constant 0 : i32
    return %c0_i32, %c0_i32_0 : i32, i32
  }
  func.func @transform_12(%arg0: i32) -> (i32, i32) {
    %c0_i32 = arith.constant 0 : i32
    %c0_i32_0 = arith.constant 0 : i32
    %c0_i32_1 = arith.constant 0 : i32
    return %c0_i32, %c0_i32_0 : i32, i32
  }
  func.func @transform_13(%arg0: i32) -> (i32, i32) {
    %c0_i32 = arith.constant 0 : i32
    %c0_i32_0 = arith.constant 0 : i32
    %c0_i32_1 = arith.constant 0 : i32
    return %c0_i32, %c0_i32_0 : i32, i32
  }
  func.func @transform_14(%arg0: i32) -> (i32, i32) {
    %c0_i32 = arith.constant 0 : i32
    %c0_i32_0 = arith.constant 0 : i32
    %c0_i32_1 = arith.constant 0 : i32
    return %c0_i32, %c0_i32_0 : i32, i32
  }
  func.func @transform_15(%arg0: i32) -> (i32, i32) {
    %c0_i32 = arith.constant 0 : i32
    %c0_i32_0 = arith.constant 0 : i32
    return %arg0, %c0_i32 : i32, i32
  }
}

</mosaic_0001>

<bundles_post_ra>
// kernel: tpu_custom_call.1
= control target key start
LH: loop header
LB: loop body
LE: loop exit
PB: predicated region body
PF: predicated region fallthrough
CT: control target
= control target key end

     0   :  { %s5210_s0 = inlined_call_operand.vmem [shape: f32[32,32], index: 0, kind: input, shape index: {}]   ;;  %s5211_s1 = inlined_call_operand.vmem [shape: f32[32,32], index: 1, kind: input, shape index: {}]   ;;  %s5212_s2 = inlined_call_operand.hbm [shape: f32[16,16], index: 2, kind: input, shape index: {}]   ;;  %s5213_s3 = inlined_call_operand.hbm [shape: f32[16,16], index: 3, kind: input, shape index: {}]   ;;  %s5214_s4 = inlined_call_operand.vmem [shape: f32[32,96], index: 4, kind: input, shape index: {}]   ;;  %s5215_s5 = inlined_call_operand.hbm [shape: f32[32,32], index: 5, kind: input, shape index: {}]   ;;  %s5216_s6 = inlined_call_operand.hbm [shape: f32[32,32], index: 6, kind: input, shape index: {}]   ;;  %s5217_s7 = inlined_call_operand.hbm [shape: f32[32,64], index: 7, kind: input, shape index: {}]   ;;  %s5218_s8 = inlined_call_operand.hbm [shape: f32[32,32], index: 8, kind: input, shape index: {}]   ;;  %s5219_s9 = inlined_call_operand.hbm [shape: f32[32,64], index: 9, kind: input, shape index: {}]   ;;  %s5220_s10 = inlined_call_operand.vmem [shape: f32[1,64], index: 10, kind: input, shape index: {}]   ;;  %s5221_s11 = inlined_call_operand.vmem [shape: f32[64,32], index: 11, kind: input, shape index: {}]   ;;  %s5222_s12 = inlined_call_operand.vmem [shape: f32[1,32], index: 12, kind: input, shape index: {}]   ;;  %s5223_s13 = inlined_call_operand.vmem [shape: f32[3,32], index: 13, kind: input, shape index: {}]   ;;  %s5224_s14 = inlined_call_operand.vmem [shape: f32[3,32], index: 14, kind: input, shape index: {}]   ;;  %s5225_s15 = inlined_call_operand.hbm [shape: f32[32,32], index: 15, kind: output, shape index: {}]  }
   0x1   :  { %5239 = sst [smem:[#allocation29_spill]] %s5213_s3 }
   0x2   :  { %5240 = sst [smem:[#allocation30_spill]] %s5220_s10 }
   0x3   :  { %5241 = sst [smem:[#allocation31_spill]] %s5222_s12 }
   0x4   :  { %5242 = sst [smem:[#allocation32_spill]] %s5225_s15 }
   0x5   :  { %20 = vsyncpa [#allocation4], 0 }
   0x6   :  { %21 = vsyncpa [#allocation7], 0 }
   0x7   :  { %22 = vsyncpa [#allocation10], 0 }
   0x8   :  { %23 = vsyncpa [#allocation13], 0 }
   0x9   :  { %24 = vsyncpa [#allocation5], 0 }
   0xa   :  { %26 = vsyncpa [#allocation5 + $0x1], 0  ;;  %s4496_s18 = smov 0   ;;  %s4498_s19 = smov 0  }
   0xb   :  { %s4500_s20 = smov 0   ;;  %s4502_s21 = smov 0  }
   0xc LB: > { %5243 = sst [smem:[#allocation21_spill]] %s4377_s18  ;;  %s4517_s22 = sadd.s32 4294967295, %s4389_s21   ;;  %s4389_s21 = sphi %s4502_s21, %s5278_s21   ;;  %s4385_s20 = sphi %s4500_s20, %s5281_s20   ;;  %s4381_s19 = sphi %s4498_s19, %s5280_s19   ;;  %s4377_s18 = sphi %s4496_s18, %s5279_s18  }
   0xd   : > { %5244 = sst [smem:[#allocation22_spill]] %s4381_s19  ;;  %s3275_s23 = sadd.s32 4294967294, %s4389_s21  }
   0xe   : > { %5245 = sst [smem:[#allocation23_spill]] %s4385_s20  ;;  %s4521_s24 = sadd.s32 1, %s4389_s21  }
   0xf   : > { %5246 = sst [smem:[#allocation24_spill]] %s4389_s21  ;;  %s364_s25 = sadd.s32 1, %s4385_s20 }
  0x10   : > { %5247 = sst [smem:[#allocation25_spill]] %s4521_s24  ;;  %s361_s26 = ssub.s32 %s4389_s21, %s4521_s24 }
  0x11   : > { %p374_p0 = scmp.ne.s32.totalorder %s4385_s20, %s4381_s19  ;;  %p362_p1 = scmp.eq.s32.totalorder %s361_s26, 0 }
  0x12   : > { %p375_p2 = scmp.eq.s32.totalorder %s4517_s22, 1  ;;  %p380_p3 = scmp.ne.s32.totalorder %s4381_s19, %s4377_s18 }
  0x13   : > { %p381_p4 = scmp.eq.s32.totalorder %s3275_s23, 1  ;;  %p3276_p7 = scmp.ge.s32.totalorder %s4389_s21, 1 }
  0x14   : > { %s4532_s27 = scalar_select %p362_p1, %s4385_s20, %s364_s25  }
  0x15   : > { %p4534_p5 = por %p375_p2, %p374_p0  ;;  %p4538_p6 = por %p381_p4, %p380_p3 }
  0x16   : > { %5248 = sst [smem:[#allocation26_spill]] %s4532_s27  ;;  %p388_p8 = scmp.lt.s32.totalorder %s4389_s21, 3 }
  0x17   : > { %s5249_s28 = scalar_select %p4534_p5, 1, 0 }
  0x18   : > { %s5251_s29 = scalar_select %p4538_p6, 1, 0 }
  0x19   : > { %5250 = sst [smem:[#allocation27_spill]] %s5249_s28  ;;  %p5233_p9 = scmp.eq.s32.totalorder %s4517_s22, 0 }
  0x1a   : > { %5252 = sst [smem:[#allocation28_spill]] %s5251_s29  ;;  %p4545_p10 = pnand %p3276_p7, %p388_p8 }
  0x1b   : > { %s4391_s16 = smov [#allocation6]   ;;  %s4392_s25 = smov [#allocation9]  }
  0x1c   : > { %s5253_s30 = scalar_select %p4545_p10, 1, 0 }
  0x1d   : > { %p3855_p11 = pneg %p4545_p10  ;;  %s413_s17 = sshll.u32 %s4391_s16, 4  ;;  %s4551_s17 = int_to_ptr.vmem [resolvable:$true] %s413_s17 }
  0x1e   : > { %s442_s26 = sshll.u32 %s4392_s25, 4  ;;  %s4393_s27 = smov [#allocation12]   ;;  %s4559_s26 = int_to_ptr.vmem [resolvable:$true] %s442_s26 }
  0x1f   : > { %p4555_p12 = pnand %p5233_p9, %p3855_p11  ;;  %s4561_s20 = sshll.u32 %s4393_s27, 4  ;;  %s469_s20 = int_to_ptr.vmem [resolvable:$true] %s4561_s20 }
  0x20   : > { %s5255_s3 = sld [smem:[#allocation29_spill]] }
  0x21   : > { %p4571_p0 = pneg %p4555_p12 }
  0x26   : > { %s4115_s18 = scalar_lea.hbm %s5255_s3, 256 }
  0x27   : > { %p4116_p13 = scmp.ne.s32.totalorder %s5255_s3, %s4115_s18  ;;  %p4122_p3 = scmp.lt.u32.totalorder %s4115_s18, %s5255_s3 }
  0x29   : > { %p4118_p1 = pnand %p4571_p0, %p4116_p13 }
  0x2b   : > { %p4119_p2 = pneg %p4118_p1 }
  0x2d   : > { %p4124_p4 = pnand %p4122_p3, %p4119_p2 }
  0x2f   : > { %4127 = shalt.err (!%p4124_p4)
}
  0x30   : > { %s4128_s21 = scalar_lea.vmem %s4551_s17, 256  ;;  %p4136_p9 = scmp.lt.s32.totalorder %s4551_s17, %s4551_s17 }
  0x31   : > { %p4129_p7 = scmp.ne.s32.totalorder %s4551_s17, %s4128_s21  ;;  %p4137_p6 = scmp.lt.s32.totalorder %s4128_s21, %s4128_s21 }
  0x33   : > { %p4131_p8 = pnand %p4129_p7, %p4571_p0  ;;  %p4138_p13 = por %p4137_p6, %p4136_p9 }
  0x35   : > { %p4132_p11 = pneg %p4131_p8 }
  0x37   : > { %p4139_p1 = pnand %p4138_p13, %p4132_p11 }
  0x39   : > { %4142 = shalt.err (!%p4139_p1)
}
  0x3a   : > { %s4394_s24 = smov 128   ;;  %s4395_s18 = smov 8  }
  0x3b   : > { %3861 = dma.hbm_to_vmem [thread:$0]  (!%p4555_p12), %s5255_s3, 256, %s4551_s17, [#allocation7], %s4394_s24, %s4394_s24, %s4395_s18  }
  0x3c   : > { %s4143_s21 = scalar_lea.hbm %s5216_s6, 512 }
  0x3d   : > { %p4144_p6 = scmp.ne.s32.totalorder %s5216_s6, %s4143_s21  ;;  %p4150_p3 = scmp.lt.u32.totalorder %s4143_s21, %s5216_s6 }
  0x3f   : > { %p4146_p9 = pnand %p4144_p6, %p4571_p0 }
  0x41   : > { %p4147_p2 = pneg %p4146_p9 }
  0x43   : > { %p4152_p4 = pnand %p4150_p3, %p4147_p2 }
  0x45   : > { %4155 = shalt.err (!%p4152_p4)
}
  0x46   : > { %s4156_s17 = scalar_lea.vmem %s4559_s26, 512  ;;  %p4164_p13 = scmp.lt.s32.totalorder %s4559_s26, %s4559_s26 }
  0x47   : > { %p4157_p7 = scmp.ne.s32.totalorder %s4559_s26, %s4156_s17  ;;  %p4165_p1 = scmp.lt.s32.totalorder %s4156_s17, %s4156_s17 }
  0x49   : > { %p4159_p8 = pnand %p4157_p7, %p4571_p0  ;;  %p4166_p6 = por %p4165_p1, %p4164_p13 }
  0x4b   : > { %p4160_p11 = pneg %p4159_p8 }
  0x4d   : > { %p4167_p9 = pnand %p4166_p6, %p4160_p11 }
  0x4f   : > { %4170 = shalt.err (!%p4167_p9)
}
  0x50   : > { %3867 = dma.hbm_to_vmem [thread:$0]  (!%p4555_p12), %s5216_s6, 512, %s4559_s26, [#allocation10], %s4394_s24, %s4394_s24, %s4395_s18  }
  0x51   : > { %s4171_s29 = scalar_lea.hbm %s5218_s8, 512 }
  0x52   : > { %p4172_p2 = scmp.ne.s32.totalorder %s5218_s8, %s4171_s29  ;;  %p4178_p7 = scmp.lt.u32.totalorder %s4171_s29, %s5218_s8 }
  0x54   : > { %p4174_p3 = pnand %p4172_p2, %p4571_p0 }
  0x56   : > { %p4175_p4 = pneg %p4174_p3 }
  0x58   : > { %p4180_p8 = pnand %p4178_p7, %p4175_p4 }
  0x5a   : > { %4183 = shalt.err (!%p4180_p8)
}
  0x5b   : > { %s4184_s17 = scalar_lea.vmem %s469_s20, 512  ;;  %p4192_p6 = scmp.lt.s32.totalorder %s469_s20, %s469_s20 }
  0x5c   : > { %p4185_p11 = scmp.ne.s32.totalorder %s469_s20, %s4184_s17  ;;  %p4193_p9 = scmp.lt.s32.totalorder %s4184_s17, %s4184_s17 }
  0x5e   : > { %p4187_p13 = pnand %p4185_p11, %p4571_p0  ;;  %p4194_p5 = por %p4193_p9, %p4192_p6 }
  0x60   : > { %p4188_p1 = pneg %p4187_p13 }
  0x62   : > { %p4195_p10 = pnand %p4194_p5, %p4188_p1 }
  0x64   : > { %4198 = shalt.err (!%p4195_p10)
}
  0x65   : > { %3873 = dma.hbm_to_vmem [thread:$0]  (!%p4555_p12), %s5218_s8, 512, %s469_s20, [#allocation13], %s4394_s24, %s4394_s24, %s4395_s18  }
  0x66   : > { %s4396_s12 = smov [#allocation3]   ;;  %s4397_s28 = smov [#allocation8]  }
  0x67   : > { %s400_s19 = sshll.u32 %s4396_s12, 4  ;;  %s429_s29 = sshll.u32 %s4397_s28, 4  ;;  %s401_s19 = int_to_ptr.vmem [resolvable:$true] %s400_s19  ;;  %s430_s29 = int_to_ptr.vmem [resolvable:$true] %s429_s29 }
  0x68   : > { %s4199_s27 = scalar_lea.hbm %s5212_s2, 256 }
  0x69   : > { %p4200_p5 = scmp.ne.s32.totalorder %s5212_s2, %s4199_s27  ;;  %p4206_p3 = scmp.lt.u32.totalorder %s4199_s27, %s5212_s2 }
  0x6b   : > { %p4202_p10 = pnand %p4200_p5, %p4571_p0 }
  0x6d   : > { %p4203_p2 = pneg %p4202_p10 }
  0x6f   : > { %p4208_p4 = pnand %p4206_p3, %p4203_p2 }
  0x71   : > { %4211 = shalt.err (!%p4208_p4)
}
  0x72   : > { %s4212_s20 = scalar_lea.vmem %s401_s19, 256  ;;  %p4220_p13 = scmp.lt.s32.totalorder %s401_s19, %s401_s19 }
  0x73   : > { %p4213_p7 = scmp.ne.s32.totalorder %s401_s19, %s4212_s20  ;;  %p4221_p1 = scmp.lt.s32.totalorder %s4212_s20, %s4212_s20 }
  0x75   : > { %p4215_p8 = pnand %p4213_p7, %p4571_p0  ;;  %p4222_p6 = por %p4221_p1, %p4220_p13 }
  0x77   : > { %p4216_p11 = pneg %p4215_p8 }
  0x79   : > { %p4223_p9 = pnand %p4222_p6, %p4216_p11 }
  0x7b   : > { %4226 = shalt.err (!%p4223_p9)
}
  0x7c   : > { %3858 = dma.hbm_to_vmem [thread:$0]  (!%p4555_p12), %s5212_s2, 256, %s401_s19, [#allocation4], %s4394_s24, %s4394_s24, %s4395_s18  }
  0x7d   : > { %s4227_s16 = scalar_lea.hbm %s5215_s5, 512 }
  0x7e   : > { %p4228_p5 = scmp.ne.s32.totalorder %s5215_s5, %s4227_s16  ;;  %p4234_p3 = scmp.lt.u32.totalorder %s4227_s16, %s5215_s5 }
  0x80   : > { %p4230_p10 = pnand %p4228_p5, %p4571_p0 }
  0x82   : > { %p4231_p2 = pneg %p4230_p10 }
  0x84   : > { %p4236_p4 = pnand %p4234_p3, %p4231_p2 }
  0x86   : > { %4239 = shalt.err (!%p4236_p4)
}
  0x87   : > { %s4240_s26 = scalar_lea.vmem %s430_s29, 512  ;;  %p4248_p13 = scmp.lt.s32.totalorder %s430_s29, %s430_s29 }
  0x88   : > { %p4241_p7 = scmp.ne.s32.totalorder %s430_s29, %s4240_s26  ;;  %p4249_p1 = scmp.lt.s32.totalorder %s4240_s26, %s4240_s26 }
  0x8a   : > { %p4243_p8 = pnand %p4241_p7, %p4571_p0  ;;  %p4250_p6 = por %p4249_p1, %p4248_p13 }
  0x8c   : > { %p4244_p11 = pneg %p4243_p8 }
  0x8e   : > { %p4251_p9 = pnand %p4250_p6, %p4244_p11 }
  0x90   : > { %4254 = shalt.err (!%p4251_p9)
}
  0x91   : > { %3864 = dma.hbm_to_vmem [thread:$0]  (!%p4555_p12), %s5215_s5, 512, %s430_s29, [#allocation7], %s4394_s24, %s4394_s24, %s4395_s18  }
  0x92   : > { %s4398_s3 = smov [#allocation11]   ;;  %s4399_s12 = smov [#allocation14]  }
  0x93   : > { %s455_s10 = sshll.u32 %s4398_s3, 4  ;;  %s481_s28 = sshll.u32 %s4399_s12, 4  ;;  %s456_s10 = int_to_ptr.vmem [resolvable:$true] %s455_s10  ;;  %s482_s28 = int_to_ptr.vmem [resolvable:$true] %s481_s28 }
  0x94   : > { %s4255_s27 = scalar_lea.hbm %s5217_s7, 512 }
  0x95   : > { %p4256_p5 = scmp.ne.s32.totalorder %s5217_s7, %s4255_s27  ;;  %p4262_p3 = scmp.lt.u32.totalorder %s4255_s27, %s5217_s7 }
  0x97   : > { %p4258_p10 = pnand %p4256_p5, %p4571_p0 }
  0x99   : > { %p4259_p2 = pneg %p4258_p10 }
  0x9b   : > { %p4264_p4 = pnand %p4262_p3, %p4259_p2 }
  0x9d   : > { %4267 = shalt.err (!%p4264_p4)
}
  0x9e   : > { %s4268_s29 = scalar_lea.vmem %s456_s10, 512  ;;  %p4276_p13 = scmp.lt.s32.totalorder %s456_s10, %s456_s10 }
  0x9f   : > { %p4269_p7 = scmp.ne.s32.totalorder %s456_s10, %s4268_s29  ;;  %p4277_p1 = scmp.lt.s32.totalorder %s4268_s29, %s4268_s29 }
  0xa1   : > { %p4271_p8 = pnand %p4269_p7, %p4571_p0  ;;  %p4278_p6 = por %p4277_p1, %p4276_p13 }
  0xa3   : > { %p4272_p11 = pneg %p4271_p8 }
  0xa5   : > { %p4279_p9 = pnand %p4278_p6, %p4272_p11 }
  0xa7   : > { %4282 = shalt.err (!%p4279_p9)
}
  0xa8   : > { %3870 = dma.hbm_to_vmem [thread:$0]  (!%p4555_p12), %s5217_s7, 512, %s456_s10, [#allocation10], %s4394_s24, %s4394_s24, %s4395_s18  }
  0xa9   : > { %s4283_s25 = scalar_lea.hbm %s5219_s9, 512 }
  0xaa   : > { %p4284_p5 = scmp.ne.s32.totalorder %s5219_s9, %s4283_s25  ;;  %p4290_p3 = scmp.lt.u32.totalorder %s4283_s25, %s5219_s9 }
  0xac   : > { %p4286_p10 = pnand %p4284_p5, %p4571_p0 }
  0xae   : > { %p4287_p2 = pneg %p4286_p10 }
  0xb0   : > { %p4292_p4 = pnand %p4290_p3, %p4287_p2 }
  0xb2   : > { %4295 = shalt.err (!%p4292_p4)
}
  0xb3   : > { %s4296_s19 = scalar_lea.vmem %s482_s28, 512  ;;  %p4304_p13 = scmp.lt.s32.totalorder %s482_s28, %s482_s28 }
  0xb4   : > { %p4297_p7 = scmp.ne.s32.totalorder %s482_s28, %s4296_s19  ;;  %p4305_p1 = scmp.lt.s32.totalorder %s4296_s19, %s4296_s19 }
  0xb6   : > { %p4299_p8 = pnand %p4297_p7, %p4571_p0  ;;  %p4306_p6 = por %p4305_p1, %p4304_p13 }
  0xb8   : > { %p4300_p11 = pneg %p4299_p8 }
  0xba   : > { %p4307_p9 = pnand %p4306_p6, %p4300_p11 }
  0xbc   : > { %4310 = shalt.err (!%p4307_p9)
}
  0xbd   : > { %3876 = dma.hbm_to_vmem [thread:$0]  (!%p4555_p12), %s5219_s9, 512, %s482_s28, [#allocation13], %s4394_s24, %s4394_s24, %s4395_s18  }
  0xbe   : > { %p5257_p5 = scmp.ne.s32.totalorder %s5253_s30, 0 }
  0xbf   : > { %p5258_p0 = scmp.eq.s32.totalorder (!%p5257_p5), %s4517_s22, 0 }
  0xc0   : > { %530 = sbr.rel (%p5257_p5) target bundleno = 5752 (0x1678), region = 80 }
  0xc7   : > { %4356 = dma.done.wait (%p5258_p0), [#allocation4], 256   ;;  %p5259_p10 = pmov %p5258_p0 }
  0xc8   : > { %p5260_p2 = pmov %p5258_p0 }
  0xc9   : > { %4358 = vsyncadd (%p5259_p10), [#allocation4], 4294967040 }
  0xca   : > { %4360 = dma.done.wait (%p5260_p2), [#allocation7], 768   ;;  %p5261_p3 = pmov %p5258_p0 }
  0xcb   : > { %p5262_p4 = pmov %p5258_p0 }
  0xcc   : > { %4362 = vsyncadd (%p5261_p3), [#allocation7], 4294966528 }
  0xcd   : > { %4364 = dma.done.wait (%p5262_p4), [#allocation10], 1024   ;;  %p5263_p12 = pmov %p5258_p0 }
  0xce   : > { %p5264_p7 = pmov %p5258_p0 }
  0xcf   : > { %4366 = vsyncadd (%p5263_p12), [#allocation10], 4294966272 }
  0xd0   : > { %4368 = dma.done.wait (%p5264_p7), [#allocation13], 1024   ;;  %p5265_p8 = pmov %p5258_p0 }
  0xd1   : > { %s3294_s15 = sshll.u32 %s4517_s22, 1  ;;  %vm626_vm0 = vcmask 261120   ;;  %v681_v14 = vld [vmem:[%s5214_s4] sm:$0xff]  ;;  %v682_v15 = vld [vmem:[%s5214_s4 + $0x8] sm:$0xff]  ;;  %v683_v16 = vld [vmem:[%s5214_s4 + $0x10] sm:$0xff]  ;;  %vm774_vm5 = vcmask 64512  }
  0xd2   : > { %4370 = vsyncadd (%p5265_p8), [#allocation13], 4294966272  ;;  %p608_p11 = scmp.lt.s32.totalorder %s3294_s15, 3  ;;  %v3681_v17 = vpack.c.bf16 %v682_v15, %v681_v14  ;;  %v684_v18 = vld [vmem:[%s5214_s4 + $0x18] sm:$0xff]  ;;  %v3298_v36 = vld [vmem:[%s5223_s13] ss:$0 sm:$0xff] }
  0xd3   : > { %v3685_v19 = vpack.c.bf16 %v684_v18, %v683_v16  ;;  %v3299_v39 = vld [vmem:[%s5224_s14] ss:$0 sm:$0xff]  ;;  %s4400_s29 = smov 88   ;;  %s4401_s23 = smov 96   ;;  %vm4806_vm6 = vmpackc.low %vm774_vm5, %vm774_vm5  ;;  %v4822_v61 = vld [vmem:[#allocation3 + $0x8] sm:$0xff]  ;;  %vm862_vm7 = vcmask 130048  }
  0xd4   : > { %s5283_s15 = smov (!%p608_p11, %s3294_s15), 3  ;;  %3682 = vmatprep.subr.bf16.mxu1 %v3681_v17  ;;  %s4402_s24 = smov 120   ;;  %vm1186_vm8 = vcmask 130112   ;;  %vm1401_vm9 = vcmask 195712   ;;  %vm1616_vm10 = vcmask 261312  }
  0xd5   : > { %s3295_s30 = sshll.u32 %s5283_s15, 3  ;;  %3684 = vmatpush3.bf16.msra.mxu1 %v3681_v17  ;;  %s4404_s28 = smov 80  }
  0xd6   : > { %s611_s18 = scalar_lea.vmem %s5210_s0, %s3295_s30  ;;  %3686 = vmatprep.subr.bf16.mxu1 %v3685_v19  ;;  %s4405_s20 = smov 112  }
  0xd7   : > { %v4754_v0 = vld [vmem:[%s611_s18] sm:$0xff]  ;;  %v4756_v1 = vld [vmem:[%s611_s18 + $0x8] sm:$0xff]  ;;  %s4403_s18 = smov 56   ;;  %s4406_s3 = smov 72  }
  0xd8   : > { %v627_v2 = vsel %vm626_vm0, %v4754_v0, 0.0  ;;  %v630_v3 = vsel %vm626_vm0, %v4756_v1, 0.0  ;;  %s4407_s12 = smov 64   ;;  %s4408_s16 = smov 104  }
  0xd9   : > { %628 = vadd.xlane.f32.xlu0 %v627_v2  ;;  %3688 = vmatpush3.bf16.msra.mxu1 %v3685_v19  ;;  %v4824_v2 = vld [vmem:[#allocation3] sm:$0xff]  ;;  %s4409_s25 = smov 48   ;;  %s4410_s27 = smov 40  }
  0xda   : > { %s4411_s21 = smov 16   ;;  %s4412_s17 = smov 8  }
  0xdb   : > { %s4413_s26 = smov 24   ;;  %s5270_s10 = sld [smem:[#allocation31_spill]] }
  0xdc   : > { %s3373_s15 = sshll.u32 %s4517_s22, 8 }
  0xdd   : > { %631 = vadd.xlane.f32.xlu0 %v630_v3 }
 0x166   : > { %v629_v4 = vpop.xlane.xlu0 %628 }
 0x167   : > { %v634_v5 = vmul.f32 0.03125, %v629_v4 }
 0x169   : > { %v636_v6 = vsub.f32 %v4754_v0, %v634_v5 }
 0x16a   : > { %v632_v7 = vpop.xlane.xlu0 %631 }
 0x16b   : > { %v635_v8 = vmul.f32 0.03125, %v632_v7  ;;  %v638_v9 = vmul.f32 %v636_v6, %v636_v6  ;;  %v667_v37 = vmul.f32 %v3298_v36, %v636_v6 }
 0x16d   : > { %v637_v10 = vsub.f32 %v4756_v1, %v635_v8  ;;  %v640_v11 = vsel %vm626_vm0, %v638_v9, 0.0 }
 0x16e   : > { %641 = vadd.xlane.f32.xlu1 %v640_v11 }
 0x16f   : > { %v639_v12 = vmul.f32 %v637_v10, %v637_v10  ;;  %v668_v41 = vmul.f32 %v3298_v36, %v637_v10 }
 0x171   : > { %v643_v13 = vsel %vm626_vm0, %v639_v12, 0.0 }
 0x172   : > { %644 = vadd.xlane.f32.xlu1 %v643_v13 }
 0x1fb   : > { %v642_v20 = vpop.xlane.xlu1 %641 }
 0x1fc   : > { %v647_v21 = vmul.f32 0.032258064, %v642_v20 }
 0x1fe   : > { %4027 = vrsqrt.f32 %v647_v21  ;;  %vm651_vm1 = vcmp.eq.f32.partialorder %v647_v21, inf  ;;  %v654_v26 = vand.u32 2147483648, %v647_v21  ;;  %vm653_vm2 = vcmp.eq.f32.partialorder %v647_v21, 0.0 }
 0x1ff   : > { %v645_v22 = vpop.xlane.xlu1 %644 }
 0x200   : > { %v648_v23 = vmul.f32 0.032258064, %v645_v22 }
 0x202   : > { %4029 = vrsqrt.f32 %v648_v23  ;;  %vm658_vm3 = vcmp.eq.f32.partialorder %v648_v23, inf  ;;  %v661_v32 = vand.u32 2147483648, %v648_v23  ;;  %vm660_vm4 = vcmp.eq.f32.partialorder %v648_v23, 0.0 }
 0x208   : > { %v4028_v24 = vpop.eup %4027 }
 0x209   : > { %v650_v25 = vmul.f32 %v4028_v24, %v647_v21 }
 0x20b   : > { %v652_v27 = vsel %vm651_vm1, %v647_v21, %v650_v25 }
 0x20c   : > { %v4030_v28 = vpop.eup %4029  ;;  %v655_v29 = vsel %vm653_vm2, %v654_v26, %v652_v27 }
 0x20d   : > { %v657_v30 = vmul.f32 %v4030_v28, %v648_v23  ;;  %v669_v31 = vadd.f32 1e-06, %v655_v29 }
 0x20f   : > { %v659_v33 = vsel %vm658_vm3, %v648_v23, %v657_v30  ;;  %4031 = vrcp.f32 %v669_v31 }
 0x210   : > { %v662_v34 = vsel %vm660_vm4, %v661_v32, %v659_v33  ;;  %vm3023_vm4 = vcmask 523264  }
 0x211   : > { %v670_v35 = vadd.f32 1e-06, %v662_v34 }
 0x213   : > { %4033 = vrcp.f32 %v670_v35 }
 0x219   : > { %v4032_v38 = vpop.eup %4031 }
 0x21a   : > { %v672_v40 = vmul.f32 %v4032_v38, %v667_v37 }
 0x21c   : > { %v679_v42 = vadd.f32 %v3299_v39, %v672_v40 }
 0x21d   : > { %v4034_v43 = vpop.eup %4033 }
 0x21e   : > { %v674_v44 = vmul.f32 %v4034_v43, %v668_v41  ;;  %3492 = vmatprep.mubr.msk.f32.mxu1 %vm626_vm0, %v679_v42 }
 0x220   : > { %v680_v45 = vadd.f32 %v3299_v39, %v674_v44 }
 0x222   : > { %3493 = vmatmul.mubr.msk.f32.vlgmr.msra.gmra.mrb[0].mxu1 %vm626_vm0, %v680_v45 }
 0x2f5   : > { %v4786_v46 = vpop.f32.mrb[0].mxu1 }
 0x2f6   : > { %v4788_v47 = vpop.f32.mrb[1].mxu1 }
 0x2f7   : > { %3499 = vmatprep.mubr.msk.f32.mxu1 %vm774_vm5, %v4788_v47  ;;  %v4794_v48 = vpack.i.bf16 %v4786_v46, %v4788_v47 }
 0x2f9   : > { %3958 = vrot.lane.b32.xlu1 %v4794_v48, %s4400_s29  ;;  %3953 = vrot.lane.b32.xlu0 %v4794_v48, %s4401_s23 }
 0x2fd   : > { %974 = vrot.lane.b32.xlu1 %v4788_v47, %s4402_s24 }
 0x301   : > { %976 = vrot.lane.b32.xlu1 %v4786_v46, %s4402_s24 }
 0x36b   : > { %v3959_v49 = vpop.permute.xlu1 %3958  ;;  %v3954_v50 = vpop.permute.xlu0 %3953 }
 0x36c   : > { %v3961_v51 = vunpack.i.h.bf16 %v3959_v49  ;;  %v3960_v52 = vunpack.i.l.bf16 %v3959_v49  ;;  %v3956_v53 = vunpack.i.h.bf16 %v3954_v50  ;;  %v3955_v54 = vunpack.i.l.bf16 %v3954_v50 }
 0x36e   : > { %v3689_v56 = vpack.c.bf16 %v3956_v53, %v3955_v54  ;;  %v3699_v57 = vpack.c.bf16 %v3961_v51, %v3960_v52 }
 0x36f   : > { %v975_v58 = vpop.permute.xlu1 %974 }
 0x370   : > { %3691 = vmatprep.subr.msk.bf16.mxu1 %vm4806_vm6, %v3689_v56 }
 0x371   : > { %3694 = vmatpush3.bf16.xpose.msk.msra.mxu1 %vm4806_vm6, %v3689_v56 }
 0x372   : > { %3701 = vmatprep.subr.msk.bf16.mxu1 %vm4806_vm6, %v3699_v57 }
 0x373   : > { %v977_v59 = vpop.permute.xlu1 %976 }
 0x378   : > { %3500 = vmatmul.mubr.msk.f32.vlgmr.msra.gmra.mrb[2].mxu1 %vm774_vm5, %v4786_v46 }
 0x379   : > { %3704 = vmatpush3.bf16.xpose.msk.msra.mxu1 %vm4806_vm6, %v3699_v57  ;;  %3513 = vmatprep.mubr.msk.f32.mxu1 %vm774_vm5, %v975_v58 }
 0x380   : > { %3514 = vmatmul.mubr.msk.f32.vlgmr.msra.gmra.mrb[4].mxu1 %vm774_vm5, %v977_v59 }
 0x44b   : > { %v3501_v60 = vpop.f32.mrb[2].mxu1 }
 0x44c   : > { %v859_v62 = vmul.f32 0.35355338, %v3501_v60  ;;  %v849_v63 = vpop.f32.mrb[3].mxu1 }
 0x44d   : > { %v858_v3 = vmul.f32 0.35355338, %v849_v63 }
 0x44e   : > { %v861_v4 = vadd.f32 %v859_v62, %v4822_v61 }
 0x44f   : > { %v860_v5 = vadd.f32 %v858_v3, %v4824_v2 }
 0x450   : > { %v866_v6 = vsel %vm862_vm7, %v861_v4, -inf }
 0x451   : > { %867 = vmax.xlane.f32.xlu1 %v866_v6  ;;  %v863_v7 = vsel %vm862_vm7, %v860_v5, -inf }
 0x452   : > { %864 = vmax.xlane.f32.xlu0 %v863_v7 }
 0x453   : > { %v3515_v8 = vpop.f32.mrb[4].mxu1 }
 0x454   : > { %v1066_v9 = vmul.f32 0.35355338, %v3515_v8  ;;  %v1056_v10 = vpop.f32.mrb[5].mxu1 }
 0x455   : > { %v1065_v11 = vmul.f32 0.35355338, %v1056_v10 }
 0x456   : > { %v1068_v12 = vadd.f32 %v1066_v9, %v4822_v61 }
 0x457   : > { %v1067_v14 = vadd.f32 %v1065_v11, %v4824_v2 }
 0x458   : > { %v1072_v13 = vsel %vm862_vm7, %v1068_v12, -inf }
 0x459   : > { %1073 = vmax.xlane.f32.xlu0 %v1072_v13  ;;  %v1069_v15 = vsel %vm862_vm7, %v1067_v14, -inf }
 0x45d   : > { %1070 = vmax.xlane.f32.xlu0 %v1069_v15 }
 0x462   : > { %3968 = vrot.lane.b32.xlu1 %v4794_v48, %s4403_s18  ;;  %s617_s18 = scalar_lea.vmem %s5211_s1, %s3295_s30 }
 0x466   : > { %3973 = vrot.lane.b32.xlu1 %v4794_v48, %s4404_s28 }
 0x46a   : > { %1189 = vrot.lane.b32.xlu1 %v4788_v47, %s4405_s20 }
 0x46e   : > { %3983 = vrot.lane.b32.xlu1 %v4794_v48, %s4406_s3 }
 0x473   : > { %3963 = vrot.lane.b32.xlu0 %v4794_v48, %s4407_s12 }
 0x477   : > { %1191 = vrot.lane.b32.xlu0 %v4786_v46, %s4405_s20 }
 0x4de   : > { %v868_v18 = vpop.xlane.xlu1 %867 }
 0x4df   : > { %v865_v16 = vpop.xlane.xlu0 %864  ;;  %v870_v20 = vsub.f32 %v861_v4, %v868_v18 }
 0x4e0   : > { %v869_v17 = vsub.f32 %v860_v5, %v865_v16 }
 0x4e1   : > { %v873_v22 = vmul.f32 1.442695, %v870_v20 }
 0x4e2   : > { %v871_v19 = vmul.f32 1.442695, %v869_v17  ;;  %v3969_v25 = vpop.permute.xlu1 %3968 }
 0x4e3   : > { %v3971_v32 = vunpack.i.h.bf16 %v3969_v25  ;;  %v3970_v33 = vunpack.i.l.bf16 %v3969_v25 }
 0x4e4   : > { %4035 = vpow2.f32 %v871_v19 }
 0x4e5   : > { %4037 = vpow2.f32 %v873_v22  ;;  %v3705_v37 = vpack.c.bf16 %v3971_v32, %v3970_v33 }
 0x4e6   : > { %v1074_v21 = vpop.xlane.xlu0 %1073  ;;  %v3974_v35 = vpop.permute.xlu1 %3973 }
 0x4e7   : > { %v1076_v23 = vsub.f32 %v1068_v12, %v1074_v21  ;;  %v3976_v38 = vunpack.i.h.bf16 %v3974_v35  ;;  %v3975_v39 = vunpack.i.l.bf16 %v3974_v35 }
 0x4e9   : > { %v1079_v27 = vmul.f32 1.442695, %v1076_v23  ;;  %v3709_v41 = vpack.c.bf16 %v3976_v38, %v3975_v39 }
 0x4ea   : > { %v1071_v24 = vpop.xlane.xlu0 %1070  ;;  %v1190_v44 = vpop.permute.xlu1 %1189 }
 0x4eb   : > { %v1075_v26 = vsub.f32 %v1067_v14, %v1071_v24 }
 0x4ed   : > { %v1077_v28 = vmul.f32 1.442695, %v1075_v26 }
 0x4ee   : > { %v4844_v29 = vpop.eup %4035  ;;  %v3964_v30 = vpop.permute.xlu0 %3963 }
 0x4ef   : > { %4039 = vpow2.f32 %v1077_v28  ;;  %v3966_v31 = vunpack.i.h.bf16 %v3964_v30  ;;  %3506 = vmatprep.mubr.msk.f32.mxu0 %vm862_vm7, %v4844_v29  ;;  %v3965_v34 = vunpack.i.l.bf16 %v3964_v30  ;;  %v4848_v40 = vpop.eup %4037  ;;  %v3984_v63 = vpop.permute.xlu1 %3983 }
 0x4f0   : > { %4041 = vpow2.f32 %v1079_v27  ;;  %v3986_v10 = vunpack.i.h.bf16 %v3984_v63  ;;  %v3985_v11 = vunpack.i.l.bf16 %v3984_v63 }
 0x4f1   : > { %v3695_v36 = vpack.c.bf16 %v3966_v31, %v3965_v34 }
 0x4f2   : > { %v1192_v45 = vpop.permute.xlu0 %1191  ;;  %v3719_v14 = vpack.c.bf16 %v3986_v10, %v3985_v11 }
 0x4f3   : > { %3696 = vmatprep.subr.bf16.mxu0 %v3695_v36 }
 0x4f4   : > { %3698 = vmatpush3.bf16.msra.mxu0 %v3695_v36 }
 0x4f5   : > { %3706 = vmatprep.subr.bf16.mxu0 %v3705_v37 }
 0x4f7   : > { %3507 = vmatmul.mubr.msk.f32.vlgmr.msra.gmra.mrb[0].mxu0 %vm862_vm7, %v4848_v40 }
 0x4f8   : > { %3708 = vmatpush3.bf16.msra.mxu0 %v3705_v37 }
 0x4f9   : > { %v4852_v42 = vpop.eup %4039  ;;  %3711 = vmatprep.subr.msk.bf16.mxu0 %vm4806_vm6, %v3709_v41 }
 0x4fa   : > { %3520 = vmatprep.mubr.msk.f32.mxu0 %vm862_vm7, %v4852_v42  ;;  %v4858_v43 = vpop.eup %4041  ;;  %v1081_v28 = vsel %vm862_vm7, %v4852_v42, 0.0 }
 0x4fb   : > { %3521 = vmatmul.mubr.msk.f32.vlgmr.msra.gmra.mrb[2].mxu0 %vm862_vm7, %v4858_v43  ;;  %v1084_v30 = vsel %vm862_vm7, %v4858_v43, 0.0 }
 0x4fc   : > { %3527 = vmatprep.mubr.msk.f32.mxu0 %vm774_vm5, %v1190_v44 }
 0x501   : > { %3714 = vmatpush3.bf16.xpose.msk.msra.mxu0 %vm4806_vm6, %v3709_v41 }
 0x508   : > { %3528 = vmatmul.mubr.msk.f32.vlgmr.msra.gmra.mrb[4].mxu0 %vm774_vm5, %v1192_v45 }
 0x5ca   : > { %v4866_v49 = vpop.f32.mrb[0].mxu0 }
 0x5cb   : > { %v4868_v50 = vpop.f32.mrb[1].mxu0 }
 0x5ce   : > { %v4870_v51 = vpop.f32.mrb[2].mxu0 }
 0x5cf   : > { %v4872_v52 = vpop.f32.mrb[3].mxu0 }
 0x5db   : > { %v3529_v53 = vpop.f32.mrb[4].mxu0 }
 0x5dc   : > { %v1281_v54 = vmul.f32 0.35355338, %v3529_v53  ;;  %v1271_v56 = vpop.f32.mrb[5].mxu0 }
 0x5dd   : > { %v1280_v57 = vmul.f32 0.35355338, %v1271_v56  ;;  %v875_v56 = vsel %vm862_vm7, %v4844_v29, 0.0 }
 0x5de   : > { %v1283_v58 = vadd.f32 %v1281_v54, %v4822_v61 }
 0x5df   : > { %v1282_v59 = vadd.f32 %v1280_v57, %v4824_v2  ;;  %v878_v57 = vsel %vm862_vm7, %v4848_v40, 0.0 }
 0x5e0   : > { %v1287_v60 = vsel %vm862_vm7, %v1283_v58, -inf }
 0x5e1   : > { %1288 = vmax.xlane.f32.xlu0 %v1287_v60  ;;  %v1284_v62 = vsel %vm862_vm7, %v1282_v59, -inf }
 0x5e2   : > { %1285 = vmax.xlane.f32.xlu1 %v1284_v62 }
 0x5f3   : > { %1404 = vrot.lane.b32.xlu1 %v4788_v47, %s4408_s16 }
 0x5f7   : > { %3978 = vrot.lane.b32.xlu0 %v4794_v48, %s4409_s25 }
 0x5fb   : > { %1406 = vrot.lane.b32.xlu0 %v4786_v46, %s4408_s16 }
 0x66e   : > { %v1289_v3 = vpop.xlane.xlu0 %1288 }
 0x66f   : > { %v1291_v4 = vsub.f32 %v1283_v58, %v1289_v3  ;;  %v1286_v5 = vpop.xlane.xlu1 %1285 }
 0x670   : > { %v1290_v6 = vsub.f32 %v1282_v59, %v1286_v5 }
 0x671   : > { %v1294_v7 = vmul.f32 1.442695, %v1291_v4 }
 0x672   : > { %v1292_v8 = vmul.f32 1.442695, %v1290_v6  ;;  %v3979_v9 = vpop.permute.xlu0 %3978 }
 0x673   : > { %v3981_v12 = vunpack.i.h.bf16 %v3979_v9  ;;  %v3980_v13 = vunpack.i.l.bf16 %v3979_v9  ;;  %v1405_v16 = vpop.permute.xlu1 %1404 }
 0x674   : > { %4043 = vpow2.f32 %v1292_v8 }
 0x675   : > { %4045 = vpow2.f32 %v1294_v7  ;;  %v3715_v47 = vpack.c.bf16 %v3981_v12, %v3980_v13 }
 0x676   : > { %v1407_v17 = vpop.permute.xlu0 %1406 }
 0x677   : > { %3716 = vmatprep.subr.bf16.mxu1 %v3715_v47 }
 0x678   : > { %3718 = vmatpush3.bf16.msra.mxu1 %v3715_v47 }
 0x679   : > { %3721 = vmatprep.subr.msk.bf16.mxu1 %vm4806_vm6, %v3719_v14 }
 0x67e   : > { %v4044_v46 = vpop.eup %4043 }
 0x67f   : > { %v4046_v15 = vpop.eup %4045  ;;  %3534 = vmatprep.mubr.msk.f32.mxu1 %vm862_vm7, %v4044_v46  ;;  %v1296_v31 = vsel %vm862_vm7, %v4044_v46, 0.0 }
 0x680   : > { %3535 = vmatmul.mubr.msk.f32.vlgmr.msra.gmra.mrb[6].mxu1 %vm862_vm7, %v4046_v15 }
 0x681   : > { %3724 = vmatpush3.bf16.xpose.msk.msra.mxu1 %vm4806_vm6, %v3719_v14  ;;  %3541 = vmatprep.mubr.msk.f32.mxu1 %vm774_vm5, %v1405_v16  ;;  %v1622_v14 = vld [vmem:[#allocation8 + $0x8] sm:$0xff]  ;;  %v1624_v16 = vld [vmem:[#allocation8 + $0x18] sm:$0xff] }
 0x688   : > { %3542 = vmatmul.mubr.msk.f32.vlgmr.msra.gmra.mrb[8].mxu1 %vm774_vm5, %v1407_v17 }
 0x753   : > { %v4891_v18 = vpop.f32.mrb[6].mxu1 }
 0x754   : > { %v1380_v19 = vpop.f32.mrb[7].mxu1 }
 0x75b   : > { %v3543_v20 = vpop.f32.mrb[8].mxu1 }
 0x75c   : > { %v1496_v21 = vmul.f32 0.35355338, %v3543_v20  ;;  %v1486_v22 = vpop.f32.mrb[9].mxu1 }
 0x75d   : > { %v1495_v23 = vmul.f32 0.35355338, %v1486_v22 }
 0x75e   : > { %v1498_v24 = vadd.f32 %v1496_v21, %v4822_v61  ;;  %v1299_v61 = vsel %vm862_vm7, %v4046_v15, 0.0  ;;  %v1623_v15 = vld [vmem:[#allocation8 + $0x10] sm:$0xff] }
 0x75f   : > { %v1497_v25 = vadd.f32 %v1495_v23, %v4824_v2  ;;  %v3733_v17 = vpack.c.bf16 %v1624_v16, %v1623_v15 }
 0x760   : > { %v1502_v26 = vsel %vm862_vm7, %v1498_v24, -inf }
 0x761   : > { %1503 = vmax.xlane.f32.xlu0 %v1502_v26  ;;  %v1499_v27 = vsel %vm862_vm7, %v1497_v25, -inf }
 0x762   : > { %1500 = vmax.xlane.f32.xlu1 %v1499_v27 }
 0x766   : > { %1082 = vadd.xlane.f32.xlu1 %v1081_v28 }
 0x76a   : > { %1085 = vadd.xlane.f32.xlu1 %v1084_v30 }
 0x76e   : > { %1297 = vadd.xlane.f32.xlu1 %v1296_v31 }
 0x772   : > { %1300 = vadd.xlane.f32.xlu1 %v1299_v61 }
 0x777   : > { %3988 = vrot.lane.b32.xlu0 %v4794_v48, %s4410_s27 }
 0x7ee   : > { %v1504_v2 = vpop.xlane.xlu0 %1503 }
 0x7ef   : > { %v1506_v32 = vsub.f32 %v1498_v24, %v1504_v2  ;;  %v1501_v33 = vpop.xlane.xlu1 %1500 }
 0x7f0   : > { %v1505_v34 = vsub.f32 %v1497_v25, %v1501_v33 }
 0x7f1   : > { %v1509_v35 = vmul.f32 1.442695, %v1506_v32 }
 0x7f2   : > { %v1507_v36 = vmul.f32 1.442695, %v1505_v34  ;;  %v3989_v37 = vpop.permute.xlu0 %3988 }
 0x7f3   : > { %4047 = vpow2.f32 %v1509_v35  ;;  %v3991_v38 = vunpack.i.h.bf16 %v3989_v37  ;;  %v3990_v39 = vunpack.i.l.bf16 %v3989_v37  ;;  %v1083_v42 = vpop.xlane.xlu1 %1082 }
 0x7f4   : > { %4049 = vpow2.f32 %v1507_v36 }
 0x7f5   : > { %v3725_v41 = vpack.c.bf16 %v3991_v38, %v3990_v39 }
 0x7f7   : > { %3726 = vmatprep.subr.bf16.mxu0 %v3725_v41  ;;  %v1086_v44 = vpop.xlane.xlu1 %1085 }
 0x7f8   : > { %3728 = vmatpush3.bf16.msra.mxu0 %v3725_v41  ;;  %v1847_v41 = vld [vmem:[#allocation11] sm:$0xff] }
 0x7fb   : > { %v1298_v54 = vpop.xlane.xlu1 %1297 }
 0x7fc   : > { %4051 = vrcp.f32 %v1298_v54  ;;  %v1763_v54 = vld [vmem:[#allocation9 + $0x8] sm:$0xff] }
 0x7fd   : > { %v4048_v43 = vpop.eup %4047  ;;  %4053 = vrcp.f32 %v1083_v42  ;;  %v1848_v42 = vld [vmem:[#allocation11 + $0x8] sm:$0xff] }
 0x7fe   : > { %v4050_v45 = vpop.eup %4049  ;;  %v1514_v48 = vsel %vm862_vm7, %v4048_v43, 0.0  ;;  %4055 = vrcp.f32 %v1086_v44  ;;  %v1849_v44 = vld [vmem:[#allocation11 + $0x10] sm:$0xff] }
 0x7ff   : > { %1515 = vadd.xlane.f32.xlu0 %v1514_v48  ;;  %3548 = vmatprep.mubr.msk.f32.mxu0 %vm862_vm7, %v4050_v45  ;;  %v1511_v53 = vsel %vm862_vm7, %v4050_v45, 0.0  ;;  %v1301_v58 = vpop.xlane.xlu1 %1300  ;;  %v1850_v45 = vld [vmem:[#allocation11 + $0x18] sm:$0xff] }
 0x800   : > { %3549 = vmatmul.mubr.msk.f32.vlgmr.msra.gmra.mrb[6].mxu0 %vm862_vm7, %v4048_v43  ;;  %1512 = vadd.xlane.f32.xlu1 %v1511_v53  ;;  %4057 = vrcp.f32 %v1301_v58  ;;  %v3745_v43 = vpack.c.bf16 %v1848_v42, %v1847_v41  ;;  %v3749_v48 = vpack.c.bf16 %v1850_v45, %v1849_v44  ;;  %v1762_v53 = vld [vmem:[#allocation9] sm:$0xff]  ;;  %v623_v58 = vld [vmem:[%s617_s18 + $0x8] sm:$0xff] }
 0x804   : > { %876 = vadd.xlane.f32.xlu1 %v875_v56  ;;  %v1764_v56 = vld [vmem:[#allocation9 + $0x10] sm:$0xff] }
 0x806   : > { %v4052_v59 = vpop.eup %4051 }
 0x807   : > { %v1390_v60 = vmul.f32 %v4052_v59, %v1380_v19  ;;  %v4054_v62 = vpop.eup %4053  ;;  %v3737_v59 = vpack.c.bf16 %v1763_v54, %v1762_v53 }
 0x808   : > { %879 = vadd.xlane.f32.xlu1 %v878_v57  ;;  %v1175_v63 = vmul.f32 %v4054_v62, %v4872_v52  ;;  %v4056_v3 = vpop.eup %4055  ;;  %v622_v57 = vld [vmem:[%s617_s18] sm:$0xff]  ;;  %s5271_s18 = sld [smem:[#allocation27_spill]] }
 0x809   : > { %v1177_v29 = vmul.f32 %v4056_v3, %v4870_v51  ;;  %3738 = vmatprep.subr.bf16.mxu1 %v3737_v59 }
 0x80a   : > { %v4058_v40 = vpop.eup %4057  ;;  %3740 = vmatpush3.bf16.msra.mxu1 %v3737_v59 }
 0x80b   : > { %v1392_v4 = vmul.f32 %v4058_v40, %v4891_v18 }
 0x80e   : > { %p5273_p1 = scmp.ne.s32.totalorder %s5271_s18, 0 }
 0x815   : > { %1395 = vrot.lane.b32.xlu0 %v1390_v60, %s4411_s21  ;;  %v1765_v60 = vld [vmem:[#allocation9 + $0x18] sm:$0xff] }
 0x816   : > { %v3741_v62 = vpack.c.bf16 %v1765_v60, %v1764_v56 }
 0x818   : > { %3742 = vmatprep.subr.bf16.mxu1 %v3741_v62 }
 0x819   : > { %1180 = vrot.lane.b32.xlu1 %v1175_v63, %s4412_s17  ;;  %3744 = vmatpush3.bf16.msra.mxu1 %v3741_v62 }
 0x81d   : > { %1182 = vrot.lane.b32.xlu1 %v1177_v29, %s4412_s17 }
 0x821   : > { %1397 = vrot.lane.b32.xlu1 %v1392_v4, %s4411_s21 }
 0x88c   : > { %v1516_v52 = vpop.xlane.xlu0 %1515 }
 0x88d   : > { %v1513_v5 = vpop.xlane.xlu1 %1512 }
 0x890   : > { %v1396_v12 = vpop.permute.xlu0 %1395 }
 0x891   : > { %v877_v6 = vpop.xlane.xlu1 %876 }
 0x892   : > { %4059 = vrcp.f32 %v877_v6 }
 0x895   : > { %v880_v7 = vpop.xlane.xlu1 %879 }
 0x896   : > { %4061 = vrcp.f32 %v880_v7 }
 0x897   : > { %4063 = vrcp.f32 %v1513_v5 }
 0x898   : > { %4065 = vrcp.f32 %v1516_v52 }
 0x899   : > { %v1181_v8 = vpop.permute.xlu1 %1180 }
 0x89c   : > { %v4060_v9 = vpop.eup %4059 }
 0x89d   : > { %v969_v10 = vmul.f32 %v4060_v9, %v4868_v50  ;;  %v1183_v11 = vpop.permute.xlu1 %1182  ;;  %v1621_v50 = vld [vmem:[#allocation8] sm:$0xff] }
 0x89e   : > { %v3729_v46 = vpack.c.bf16 %v1622_v14, %v1621_v50 }
 0x89f   : > { %972 = vst.msk [vmem:[#allocation2] sm:$0xff] %vm774_vm5, %v969_v10 }
 0x8a0   : > { %v4062_v51 = vpop.eup %4061  ;;  %1187 = vst.msk [vmem:[#allocation2] sm:$0xff] %vm1186_vm8, %v1181_v8  ;;  %3730 = vmatprep.subr.bf16.mxu0 %v3729_v46 }
 0x8a1   : > { %v971_v13 = vmul.f32 %v4062_v51, %v4866_v49  ;;  %1402 = vst.msk [vmem:[#allocation2] sm:$0xff] %vm1401_vm9, %v1396_v12  ;;  %v1398_v47 = vpop.permute.xlu1 %1397  ;;  %3732 = vmatpush3.bf16.msra.mxu0 %v3729_v46  ;;  %v4064_v18 = vpop.eup %4063  ;;  %v3329_v46 = vld [vmem:[%s5224_s14 + $0x1] ss:$0 sm:$0xff] }
 0x8a2   : > { %3734 = vmatprep.subr.bf16.mxu0 %v3733_v17  ;;  %v4066_v21 = vpop.eup %4065 }
 0x8a3   : > { %973 = vst.msk [vmem:[#allocation2 + $0x8] sm:$0xff] %vm774_vm5, %v971_v13 }
 0x8a4   : > { %1188 = vst.msk [vmem:[#allocation2 + $0x8] sm:$0xff] %vm1186_vm8, %v1183_v11 }
 0x8a5   : > { %1403 = vst.msk [vmem:[#allocation2 + $0x8] sm:$0xff] %vm1401_vm9, %v1398_v47  ;;  %3736 = vmatpush3.bf16.msra.mxu0 %v3733_v17  ;;  %v3328_v47 = vld [vmem:[%s5223_s13 + $0x1] ss:$0 sm:$0xff] }
 0x8a6   : > { %3746 = vmatprep.subr.bf16.mxu0 %v3745_v43 }
 0x8d3   : > { %v3550_v49 = vpop.f32.mrb[6].mxu0 }
 0x8d4   : > { %v1595_v19 = vpop.f32.mrb[7].mxu0  ;;  %v1607_v22 = vmul.f32 %v4066_v21, %v3550_v49 }
 0x8d5   : > { %v1605_v20 = vmul.f32 %v4064_v18, %v1595_v19 }
 0x8d7   : > { %1610 = vrot.lane.b32.xlu1 %v1605_v20, %s4413_s26 }
 0x8db   : > { %1612 = vrot.lane.b32.xlu1 %v1607_v22, %s4413_s26 }
 0x949   : > { %v1611_v23 = vpop.permute.xlu1 %1610 }
 0x94a   : > { %1617 = vst.msk [vmem:[#allocation2] sm:$0xff] %vm1616_vm10, %v1611_v23 }
 0x94d   : > { %v1613_v24 = vpop.permute.xlu1 %1612 }
 0x94e   : > { %1618 = vst.msk [vmem:[#allocation2 + $0x8] sm:$0xff] %vm1616_vm10, %v1613_v24 }
 0x951   : > { %v1619_v25 = vld [vmem:[#allocation2] sm:$0xff] }
 0x952   : > { %3559 = vmatprep.mubr.msk.f32.mxu0 %vm626_vm0, %v1619_v25 }
 0x955   : > { %v1620_v26 = vld [vmem:[#allocation2 + $0x8] sm:$0xff] }
 0x956   : > { %3560 = vmatmul.mubr.msk.f32.vlgmr.msra.gmra.mrb[8].mxu0 %vm626_vm0, %v1620_v26 }
 0x957   : > { %3748 = vmatpush3.bf16.msra.mxu0 %v3745_v43  ;;  %3581 = vmatprep.mubr.msk.f32.mxu0 %vm626_vm0, %v622_v57 }
 0x958   : > { %3750 = vmatprep.subr.bf16.mxu0 %v3749_v48 }
 0x95b   : > { %3752 = vmatpush3.bf16.msra.mxu0 %v3749_v48 }
 0x95e   : > { %3582 = vmatmul.mubr.msk.f32.vlgmr.msra.gmra.mrb[10].mxu0 %vm626_vm0, %v623_v58 }
 0xa29   : > { %v3561_v27 = vpop.f32.mrb[8].mxu0 }
 0xa2a   : > { %v4934_v28 = vadd.f32 %v3561_v27, %v4756_v1  ;;  %v1697_v30 = vpop.f32.mrb[9].mxu0 }
 0xa2b   : > { %v4937_v31 = vadd.f32 %v1697_v30, %v4754_v0 }
 0xa2c   : > { %v1713_v61 = vsel %vm626_vm0, %v4934_v28, 0.0 }
 0xa2d   : > { %1714 = vadd.xlane.f32.xlu0 %v1713_v61  ;;  %v1710_v2 = vsel %vm626_vm0, %v4937_v31, 0.0 }
 0xa2e   : > { %1711 = vadd.xlane.f32.xlu1 %v1710_v2 }
 0xa31   : > { %v3583_v20 = vpop.f32.mrb[10].mxu0 }
 0xa32   : > { %v1923_v21 = vpop.f32.mrb[11].mxu0 }
 0xa33   : > { %v4962_v22 = vpack.i.bf16 %v3583_v20, %v1923_v21  ;;  %v3753_v23 = vpack.c.bf16 %v3583_v20, %v1923_v21 }
 0xa35   : > { %3755 = vmatprep.subr.msk.bf16.mxu1 %vm4806_vm6, %v3753_v23 }
 0xa43   : > { %3993 = vrot.lane.b32.xlu0 %v4962_v22, %s4402_s24 }
 0xaba   : > { %v1715_v32 = vpop.xlane.xlu0 %1714 }
 0xabb   : > { %v1717_v33 = vmul.f32 0.03125, %v1715_v32  ;;  %v1712_v34 = vpop.xlane.xlu1 %1711 }
 0xabc   : > { %v1716_v35 = vmul.f32 0.03125, %v1712_v34 }
 0xabd   : > { %v1719_v36 = vsub.f32 %v4934_v28, %v1717_v33 }
 0xabe   : > { %v1718_v1 = vsub.f32 %v4937_v31, %v1716_v35  ;;  %v3994_v24 = vpop.permute.xlu0 %3993 }
 0xabf   : > { %v1721_v38 = vmul.f32 %v1719_v36, %v1719_v36  ;;  %v1749_v16 = vmul.f32 %v3328_v47, %v1719_v36  ;;  %v3996_v25 = vunpack.i.h.bf16 %v3994_v24  ;;  %v3995_v26 = vunpack.i.l.bf16 %v3994_v24 }
 0xac0   : > { %v1720_v37 = vmul.f32 %v1718_v1, %v1718_v1  ;;  %v1748_v50 = vmul.f32 %v3328_v47, %v1718_v1 }
 0xac1   : > { %v1725_v39 = vsel %vm626_vm0, %v1721_v38, 0.0  ;;  %v3763_v27 = vpack.c.bf16 %v3996_v25, %v3995_v26 }
 0xac2   : > { %v1722_v0 = vsel %vm626_vm0, %v1720_v37, 0.0  ;;  %v4990_v37 = vld [vmem:[#allocation6 + $0x8] sm:$0xff] }
 0xac3   : > { %1723 = vadd.xlane.f32.xlu1 %v1722_v0 }
 0xac7   : > { %1726 = vadd.xlane.f32.xlu1 %v1725_v39  ;;  %v4992_v39 = vld [vmem:[#allocation6] sm:$0xff] }
 0xb50   : > { %v1724_v63 = vpop.xlane.xlu1 %1723 }
 0xb51   : > { %v1728_v3 = vmul.f32 0.032258064, %v1724_v63 }
 0xb53   : > { %4067 = vrsqrt.f32 %v1728_v3  ;;  %vm1732_vm11 = vcmp.eq.f32.partialorder %v1728_v3, inf  ;;  %v1735_v6 = vand.u32 2147483648, %v1728_v3  ;;  %vm1734_vm12 = vcmp.eq.f32.partialorder %v1728_v3, 0.0 }
 0xb54   : > { %v1727_v29 = vpop.xlane.xlu1 %1726 }
 0xb55   : > { %v1729_v40 = vmul.f32 0.032258064, %v1727_v29 }
 0xb57   : > { %4069 = vrsqrt.f32 %v1729_v40  ;;  %vm1739_vm13 = vcmp.eq.f32.partialorder %v1729_v40, inf  ;;  %v1742_v11 = vand.u32 2147483648, %v1729_v40  ;;  %vm1741_vm14 = vcmp.eq.f32.partialorder %v1729_v40, 0.0 }
 0xb5d   : > { %v4068_v4 = vpop.eup %4067 }
 0xb5e   : > { %v1731_v5 = vmul.f32 %v4068_v4, %v1728_v3 }
 0xb60   : > { %v1733_v7 = vsel %vm1732_vm11, %v1728_v3, %v1731_v5 }
 0xb61   : > { %v4070_v8 = vpop.eup %4069  ;;  %v1736_v52 = vsel %vm1734_vm12, %v1735_v6, %v1733_v7 }
 0xb62   : > { %v1738_v9 = vmul.f32 %v4070_v8, %v1729_v40  ;;  %v1750_v10 = vadd.f32 1e-06, %v1736_v52 }
 0xb64   : > { %v1740_v51 = vsel %vm1739_vm13, %v1729_v40, %v1738_v9  ;;  %4071 = vrcp.f32 %v1750_v10 }
 0xb65   : > { %v1743_v12 = vsel %vm1741_vm14, %v1742_v11, %v1740_v51 }
 0xb66   : > { %v1751_v13 = vadd.f32 1e-06, %v1743_v12 }
 0xb68   : > { %4073 = vrcp.f32 %v1751_v13 }
 0xb6e   : > { %v4072_v14 = vpop.eup %4071 }
 0xb6f   : > { %v1753_v15 = vmul.f32 %v4072_v14, %v1748_v50 }
 0xb71   : > { %v1760_v17 = vadd.f32 %v3329_v46, %v1753_v15 }
 0xb72   : > { %v4074_v49 = vpop.eup %4073 }
 0xb73   : > { %v1755_v18 = vmul.f32 %v4074_v49, %v1749_v16  ;;  %3570 = vmatprep.mubr.msk.f32.mxu1 %vm626_vm0, %v1760_v17 }
 0xb75   : > { %v1761_v19 = vadd.f32 %v3329_v46, %v1755_v18 }
 0xb77   : > { %3571 = vmatmul.mubr.msk.f32.vlgmr.msra.gmra.mrb[10].mxu1 %vm626_vm0, %v1761_v19 }
 0xb78   : > { %3758 = vmatpush3.bf16.xpose.msk.msra.mxu1 %vm4806_vm6, %v3753_v23 }
 0xb79   : > { %3765 = vmatprep.subr.msk.bf16.mxu1 %vm4806_vm6, %v3763_v27 }
 0xc4a   : > { %v4972_v30 = vpop.f32.mrb[10].mxu1 }
 0xc4b   : > { %v4974_v61 = vpop.f32.mrb[11].mxu1 }
 0xc4c   : > { %2136 = vrot.lane.b32.xlu1 %v4974_v61, %s4402_s24  ;;  %3588 = vmatprep.mubr.msk.f32.mxu1 %vm774_vm5, %v4974_v61 }
 0xc4d   : > { %3589 = vmatmul.mubr.msk.f32.vlgmr.msra.gmra.mrb[12].mxu1 %vm774_vm5, %v4972_v30 }
 0xc4e   : > { %3768 = vmatpush3.bf16.xpose.msk.msra.mxu1 %vm4806_vm6, %v3763_v27 }
 0xc50   : > { %2138 = vrot.lane.b32.xlu1 %v4972_v30, %s4402_s24  ;;  %s5272_s24 = sld [smem:[#allocation32_spill]] }
 0xc54   : > { %3998 = vrot.lane.b32.xlu1 %v4962_v22, %s4401_s23  ;;  %s5268_s23 = sld [smem:[#allocation22_spill]] }
 0xc5a   : > { %s604_s27 = sand.u32 1, %s5268_s23   ;;  %s5162_s23 = scalar_lea.hbm %s5272_s24, %s3373_s15 }
 0xc5b   : > { %s5168_s22 = scalar_lea.sflag [#allocation5], %s604_s27 }
 0xcbe   : > { %v2137_v2 = vpop.permute.xlu1 %2136 }
 0xcbf   : > { %3602 = vmatprep.mubr.msk.f32.mxu1 %vm774_vm5, %v2137_v2 }
 0xcc2   : > { %v2139_v32 = vpop.permute.xlu1 %2138 }
 0xcc3   : > { %3603 = vmatmul.mubr.msk.f32.vlgmr.msra.gmra.mrb[14].mxu1 %vm774_vm5, %v2139_v32 }
 0xcc6   : > { %v3999_v33 = vpop.permute.xlu1 %3998 }
 0xcc7   : > { %v4001_v34 = vunpack.i.h.bf16 %v3999_v33  ;;  %v4000_v35 = vunpack.i.l.bf16 %v3999_v33 }
 0xcc9   : > { %v3759_v36 = vpack.c.bf16 %v4001_v34, %v4000_v35 }
 0xccb   : > { %3760 = vmatprep.subr.bf16.mxu0 %v3759_v36 }
 0xccc   : > { %3762 = vmatpush3.bf16.msra.mxu0 %v3759_v36 }
 0xd20   : > { %v3590_v1 = vpop.f32.mrb[12].mxu1 }
 0xd21   : > { %v2022_v0 = vmul.f32 0.35355338, %v3590_v1  ;;  %v2012_v38 = vpop.f32.mrb[13].mxu1 }
 0xd22   : > { %v2021_v41 = vmul.f32 0.35355338, %v2012_v38 }
 0xd23   : > { %v2024_v42 = vadd.f32 %v2022_v0, %v4990_v37 }
 0xd24   : > { %v2023_v43 = vadd.f32 %v2021_v41, %v4992_v39 }
 0xd25   : > { %v2028_v44 = vsel %vm862_vm7, %v2024_v42, -inf }
 0xd26   : > { %2029 = vmax.xlane.f32.xlu1 %v2028_v44  ;;  %v2025_v45 = vsel %vm862_vm7, %v2023_v43, -inf }
 0xd27   : > { %2026 = vmax.xlane.f32.xlu0 %v2025_v45 }
 0xd37   : > { %4008 = vrot.lane.b32.xlu1 %v4962_v22, %s4405_s20 }
 0xd3b   : > { %2350 = vrot.lane.b32.xlu1 %v4974_v61, %s4405_s20 }
 0xd3f   : > { %4018 = vrot.lane.b32.xlu1 %v4962_v22, %s4408_s16 }
 0xd96   : > { %v3604_v48 = vpop.f32.mrb[14].mxu1 }
 0xd97   : > { %v2228_v53 = vmul.f32 0.35355338, %v3604_v48  ;;  %v2218_v54 = vpop.f32.mrb[15].mxu1 }
 0xd98   : > { %v2227_v56 = vmul.f32 0.35355338, %v2218_v54 }
 0xd99   : > { %v2230_v57 = vadd.f32 %v2228_v53, %v4990_v37 }
 0xd9a   : > { %v2229_v59 = vadd.f32 %v2227_v56, %v4992_v39 }
 0xd9b   : > { %v2234_v58 = vsel %vm862_vm7, %v2230_v57, -inf }
 0xd9c   : > { %2235 = vmax.xlane.f32.xlu0 %v2234_v58  ;;  %v2231_v60 = vsel %vm862_vm7, %v2229_v59, -inf }
 0xda0   : > { %2232 = vmax.xlane.f32.xlu0 %v2231_v60 }
 0xdb3   : > { %v2030_v62 = vpop.xlane.xlu1 %2029 }
 0xdb4   : > { %v2032_v63 = vsub.f32 %v2024_v42, %v2030_v62  ;;  %v2027_v3 = vpop.xlane.xlu0 %2026 }
 0xdb5   : > { %v2031_v29 = vsub.f32 %v2023_v43, %v2027_v3 }
 0xdb6   : > { %v2035_v40 = vmul.f32 1.442695, %v2032_v63  ;;  %4003 = vrot.lane.b32.xlu0 %v4962_v22, %s4400_s29 }
 0xdb7   : > { %v2033_v4 = vmul.f32 1.442695, %v2031_v29  ;;  %v4009_v9 = vpop.permute.xlu1 %4008 }
 0xdb8   : > { %v4011_v12 = vunpack.i.h.bf16 %v4009_v9  ;;  %v4010_v47 = vunpack.i.l.bf16 %v4009_v9 }
 0xdb9   : > { %4075 = vpow2.f32 %v2033_v4 }
 0xdba   : > { %4077 = vpow2.f32 %v2035_v40  ;;  %2352 = vrot.lane.b32.xlu0 %v4972_v30, %s4405_s20  ;;  %v3773_v15 = vpack.c.bf16 %v4011_v12, %v4010_v47  ;;  %s4414_s20 = smov [#allocation15]  }
 0xdbb   : > { %v2351_v49 = vpop.permute.xlu1 %2350 }
 0xdbf   : > { %v4019_v35 = vpop.permute.xlu1 %4018 }
 0xdc0   : > { %v4021_v44 = vunpack.i.h.bf16 %v4019_v35  ;;  %v4020_v45 = vunpack.i.l.bf16 %v4019_v35 }
 0xdc2   : > { %v3783_v54 = vpack.c.bf16 %v4021_v44, %v4020_v45 }
 0xdc3   : > { %v5012_v5 = vpop.eup %4075 }
 0xdc4   : > { %v5014_v6 = vpop.eup %4077  ;;  %3595 = vmatprep.mubr.msk.f32.mxu0 %vm862_vm7, %v5012_v5 }
 0xdc5   : > { %3596 = vmatmul.mubr.msk.f32.vlgmr.msra.gmra.mrb[12].mxu0 %vm862_vm7, %v5014_v6 }
 0xe29   : > { %v2236_v7 = vpop.xlane.xlu0 %2235 }
 0xe2a   : > { %v2238_v8 = vsub.f32 %v2230_v57, %v2236_v7 }
 0xe2c   : > { %v2241_v11 = vmul.f32 1.442695, %v2238_v8 }
 0xe2d   : > { %v2233_v52 = vpop.xlane.xlu0 %2232 }
 0xe2e   : > { %v2237_v10 = vsub.f32 %v2229_v59, %v2233_v52 }
 0xe30   : > { %v2239_v51 = vmul.f32 1.442695, %v2237_v10 }
 0xe31   : > { %v4004_v13 = vpop.permute.xlu0 %4003 }
 0xe32   : > { %4079 = vpow2.f32 %v2239_v51  ;;  %v4006_v50 = vunpack.i.h.bf16 %v4004_v13  ;;  %v4005_v14 = vunpack.i.l.bf16 %v4004_v13 }
 0xe33   : > { %4081 = vpow2.f32 %v2241_v11 }
 0xe34   : > { %v3769_v46 = vpack.c.bf16 %v4006_v50, %v4005_v14 }
 0xe35   : > { %v2353_v18 = vpop.permute.xlu0 %2352 }
 0xe36   : > { %3770 = vmatprep.subr.bf16.mxu0 %v3769_v46 }
 0xe37   : > { %3772 = vmatpush3.bf16.msra.mxu0 %v3769_v46 }
 0xe38   : > { %3775 = vmatprep.subr.msk.bf16.mxu0 %vm4806_vm6, %v3773_v15 }
 0xe3c   : > { %v5022_v16 = vpop.eup %4079 }
 0xe3d   : > { %v5024_v17 = vpop.eup %4081  ;;  %3609 = vmatprep.mubr.msk.f32.mxu0 %vm862_vm7, %v5022_v16  ;;  %v2243_v8 = vsel %vm862_vm7, %v5022_v16, 0.0 }
 0xe3e   : > { %3610 = vmatmul.mubr.msk.f32.vlgmr.msra.gmra.mrb[14].mxu0 %vm862_vm7, %v5024_v17  ;;  %v2246_v52 = vsel %vm862_vm7, %v5024_v17, 0.0 }
 0xe3f   : > { %3616 = vmatprep.mubr.msk.f32.mxu0 %vm774_vm5, %v2351_v49 }
 0xe40   : > { %3778 = vmatpush3.bf16.xpose.msk.msra.mxu0 %vm4806_vm6, %v3773_v15 }
 0xe47   : > { %3617 = vmatmul.mubr.msk.f32.vlgmr.msra.gmra.mrb[16].mxu0 %vm774_vm5, %v2353_v18 }
 0xe98   : > { %v5034_v19 = vpop.f32.mrb[12].mxu0 }
 0xe99   : > { %v5036_v20 = vpop.f32.mrb[13].mxu0 }
 0xf11   : > { %v5038_v21 = vpop.f32.mrb[14].mxu0 }
 0xf12   : > { %v5040_v23 = vpop.f32.mrb[15].mxu0 }
 0xf1a   : > { %v3618_v24 = vpop.f32.mrb[16].mxu0 }
 0xf1b   : > { %v2442_v25 = vmul.f32 0.35355338, %v3618_v24  ;;  %v2432_v26 = vpop.f32.mrb[17].mxu0 }
 0xf1c   : > { %v2441_v27 = vmul.f32 0.35355338, %v2432_v26  ;;  %v2037_v26 = vsel %vm862_vm7, %v5012_v5, 0.0 }
 0xf1d   : > { %v2444_v2 = vadd.f32 %v2442_v25, %v4990_v37 }
 0xf1e   : > { %v2443_v32 = vadd.f32 %v2441_v27, %v4992_v39  ;;  %v2040_v27 = vsel %vm862_vm7, %v5014_v6, 0.0 }
 0xf1f   : > { %v2448_v33 = vsel %vm862_vm7, %v2444_v2, -inf }
 0xf20   : > { %2449 = vmax.xlane.f32.xlu0 %v2448_v33  ;;  %v2445_v34 = vsel %vm862_vm7, %v2443_v32, -inf }
 0xf21   : > { %2446 = vmax.xlane.f32.xlu1 %v2445_v34 }
 0xf32   : > { %2564 = vrot.lane.b32.xlu1 %v4974_v61, %s4408_s16 }
 0xf36   : > { %4013 = vrot.lane.b32.xlu0 %v4962_v22, %s4404_s28 }
 0xf3a   : > { %2566 = vrot.lane.b32.xlu0 %v4972_v30, %s4408_s16  ;;  %s5269_s16 = sld [smem:[#allocation30_spill]] }
 0xfad   : > { %v2450_v36 = vpop.xlane.xlu0 %2449 }
 0xfae   : > { %v2452_v1 = vsub.f32 %v2444_v2, %v2450_v36  ;;  %v2447_v0 = vpop.xlane.xlu1 %2446 }
 0xfaf   : > { %v2451_v38 = vsub.f32 %v2443_v32, %v2447_v0 }
 0xfb0   : > { %v2455_v41 = vmul.f32 1.442695, %v2452_v1 }
 0xfb1   : > { %v2453_v42 = vmul.f32 1.442695, %v2451_v38  ;;  %v4014_v43 = vpop.permute.xlu0 %4013 }
 0xfb2   : > { %v4016_v48 = vunpack.i.h.bf16 %v4014_v43  ;;  %v4015_v53 = vunpack.i.l.bf16 %v4014_v43  ;;  %v2565_v57 = vpop.permute.xlu1 %2564 }
 0xfb3   : > { %4083 = vpow2.f32 %v2453_v42 }
 0xfb4   : > { %4085 = vpow2.f32 %v2455_v41  ;;  %v3779_v61 = vpack.c.bf16 %v4016_v48, %v4015_v53 }
 0xfb5   : > { %v2567_v58 = vpop.permute.xlu0 %2566 }
 0xfb6   : > { %3780 = vmatprep.subr.bf16.mxu1 %v3779_v61 }
 0xfb7   : > { %3782 = vmatpush3.bf16.msra.mxu1 %v3779_v61  ;;  %v2781_v61 = vld [vmem:[#allocation12 + $0x8] sm:$0xff] }
 0xfb8   : > { %3785 = vmatprep.subr.msk.bf16.mxu1 %vm4806_vm6, %v3783_v54 }
 0xfbd   : > { %v4084_v30 = vpop.eup %4083 }
 0xfbe   : > { %v4086_v56 = vpop.eup %4085  ;;  %3623 = vmatprep.mubr.msk.f32.mxu1 %vm862_vm7, %v4084_v30  ;;  %v2457_v9 = vsel %vm862_vm7, %v4084_v30, 0.0  ;;  %v2782_v30 = vld [vmem:[#allocation12 + $0x10] sm:$0xff] }
 0xfbf   : > { %3624 = vmatmul.mubr.msk.f32.vlgmr.msra.gmra.mrb[16].mxu1 %vm862_vm7, %v4086_v56 }
 0xfc0   : > { %3788 = vmatpush3.bf16.xpose.msk.msra.mxu1 %vm4806_vm6, %v3783_v54  ;;  %3630 = vmatprep.mubr.msk.f32.mxu1 %vm774_vm5, %v2565_v57 }
 0xfc7   : > { %3631 = vmatmul.mubr.msk.f32.vlgmr.msra.gmra.mrb[18].mxu1 %vm774_vm5, %v2567_v58 }
0x1092   : > { %v3625_v59 = vpop.f32.mrb[16].mxu1 }
0x1093   : > { %v5060_v60 = vpop.f32.mrb[17].mxu1 }
0x109a   : > { %v3632_v62 = vpop.f32.mrb[18].mxu1 }
0x109b   : > { %v2656_v63 = vmul.f32 0.35355338, %v3632_v62  ;;  %v2646_v3 = vpop.f32.mrb[19].mxu1 }
0x109c   : > { %v2655_v29 = vmul.f32 0.35355338, %v2646_v3 }
0x109d   : > { %v2658_v40 = vadd.f32 %v2656_v63, %v4990_v37  ;;  %v2460_v37 = vsel %vm862_vm7, %v4086_v56, 0.0  ;;  %v2783_v56 = vld [vmem:[#allocation12 + $0x18] sm:$0xff] }
0x109e   : > { %v2657_v4 = vadd.f32 %v2655_v29, %v4992_v39  ;;  %v3797_v57 = vpack.c.bf16 %v2783_v56, %v2782_v30 }
0x109f   : > { %v2662_v7 = vsel %vm862_vm7, %v2658_v40, -inf }
0x10a0   : > { %2663 = vmax.xlane.f32.xlu0 %v2662_v7  ;;  %v2659_v55 = vsel %vm862_vm7, %v2657_v4, -inf }
0x10a1   : > { %2660 = vmax.xlane.f32.xlu1 %v2659_v55 }
0x10a5   : > { %2244 = vadd.xlane.f32.xlu1 %v2243_v8 }
0x10a9   : > { %2247 = vadd.xlane.f32.xlu1 %v2246_v52 }
0x10ad   : > { %2458 = vadd.xlane.f32.xlu1 %v2457_v9 }
0x10b1   : > { %2461 = vadd.xlane.f32.xlu1 %v2460_v37 }
0x10b6   : > { %4023 = vrot.lane.b32.xlu0 %v4962_v22, %s4406_s3  ;;  %s4315_s3 = sshll.u32 %s4414_s20, 4  ;;  %s4316_s3 = int_to_ptr.vmem [resolvable:$false] %s4315_s3 }
0x112d   : > { %v2664_v39 = vpop.xlane.xlu0 %2663 }
0x112e   : > { %v2666_v10 = vsub.f32 %v2658_v40, %v2664_v39  ;;  %v2661_v11 = vpop.xlane.xlu1 %2660 }
0x112f   : > { %v2665_v51 = vsub.f32 %v2657_v4, %v2661_v11 }
0x1130   : > { %v2669_v12 = vmul.f32 1.442695, %v2666_v10 }
0x1131   : > { %v2667_v13 = vmul.f32 1.442695, %v2665_v51  ;;  %v4024_v47 = vpop.permute.xlu0 %4023 }
0x1132   : > { %4087 = vpow2.f32 %v2669_v12  ;;  %v4026_v50 = vunpack.i.h.bf16 %v4024_v47  ;;  %v4025_v14 = vunpack.i.l.bf16 %v4024_v47  ;;  %v2245_v46 = vpop.xlane.xlu1 %2244 }
0x1133   : > { %4089 = vpow2.f32 %v2667_v13 }
0x1134   : > { %v3789_v15 = vpack.c.bf16 %v4026_v50, %v4025_v14  ;;  %v2921_v14 = vld [vmem:[#allocation14] sm:$0xff] }
0x1136   : > { %3790 = vmatprep.subr.bf16.mxu0 %v3789_v15  ;;  %v2248_v16 = vpop.xlane.xlu1 %2247 }
0x1137   : > { %3792 = vmatpush3.bf16.msra.mxu0 %v3789_v15  ;;  %v2923_v15 = vld [vmem:[#allocation14 + $0x10] sm:$0xff] }
0x113a   : > { %v2459_v49 = vpop.xlane.xlu1 %2458 }
0x113c   : > { %v4088_v17 = vpop.eup %4087 }
0x113d   : > { %v4090_v18 = vpop.eup %4089  ;;  %v2674_v22 = vsel %vm862_vm7, %v4088_v17, 0.0 }
0x113e   : > { %2675 = vadd.xlane.f32.xlu0 %v2674_v22  ;;  %3637 = vmatprep.mubr.msk.f32.mxu0 %vm862_vm7, %v4090_v18  ;;  %v2671_v24 = vsel %vm862_vm7, %v4090_v18, 0.0  ;;  %v2462_v25 = vpop.xlane.xlu1 %2461  ;;  %v3015_v18 = vld [vmem:[%s5221_s11] sm:$0xff]  ;;  %v3016_v22 = vld [vmem:[%s5221_s11 + $0x8] sm:$0xff] }
0x113f   : > { %3638 = vmatmul.mubr.msk.f32.vlgmr.msra.gmra.mrb[18].mxu0 %vm862_vm7, %v4088_v17  ;;  %2672 = vadd.xlane.f32.xlu1 %v2671_v24  ;;  %4091 = vrcp.f32 %v2462_v25  ;;  %v2924_v17 = vld [vmem:[#allocation14 + $0x18] sm:$0xff]  ;;  %v3017_v24 = vld [vmem:[%s5221_s11 + $0x10] sm:$0xff]  ;;  %v3809_v25 = vpack.c.bf16 %v3016_v22, %v3015_v18 }
0x1140   : > { %4093 = vrcp.f32 %v2245_v46  ;;  %v2922_v46 = vld [vmem:[#allocation14 + $0x8] sm:$0xff] }
0x1141   : > { %4095 = vrcp.f32 %v2248_v16  ;;  %v3801_v16 = vpack.c.bf16 %v2922_v46, %v2921_v14 }
0x1142   : > { %4097 = vrcp.f32 %v2459_v49  ;;  %v3805_v49 = vpack.c.bf16 %v2924_v17, %v2923_v15 }
0x1143   : > { %2038 = vadd.xlane.f32.xlu1 %v2037_v26  ;;  %3802 = vmatprep.subr.bf16.mxu1 %v3801_v16  ;;  %v3018_v26 = vld [vmem:[%s5221_s11 + $0x18] sm:$0xff] }
0x1144   : > { %3804 = vmatpush3.bf16.msra.mxu1 %v3801_v16 }
0x1145   : > { %3806 = vmatprep.subr.bf16.mxu1 %v3805_v49 }
0x1147   : > { %2041 = vadd.xlane.f32.xlu1 %v2040_v27  ;;  %v3813_v27 = vpack.c.bf16 %v3018_v26, %v3017_v24 }
0x1148   : > { %3808 = vmatpush3.bf16.msra.mxu1 %v3805_v49 }
0x1149   : > { %v4092_v2 = vpop.eup %4091 }
0x114a   : > { %v2553_v32 = vmul.f32 %v4092_v2, %v3625_v59  ;;  %v4094_v33 = vpop.eup %4093  ;;  %v3019_v2 = vld [vmem:[%s5221_s11 + $0x20] sm:$0xff] }
0x114b   : > { %v2337_v34 = vmul.f32 %v4094_v33, %v5040_v23  ;;  %v4096_v35 = vpop.eup %4095 }
0x114c   : > { %v2339_v5 = vmul.f32 %v4096_v35, %v5038_v21  ;;  %v4098_v36 = vpop.eup %4097 }
0x114d   : > { %v2551_v6 = vmul.f32 %v4098_v36, %v5060_v60 }
0x1154   : > { %2558 = vrot.lane.b32.xlu0 %v2553_v32, %s4411_s21  ;;  %v3020_v32 = vld [vmem:[%s5221_s11 + $0x28] sm:$0xff] }
0x1155   : > { %v3817_v33 = vpack.c.bf16 %v3020_v32, %v3019_v2 }
0x1158   : > { %2342 = vrot.lane.b32.xlu1 %v2337_v34, %s4412_s17 }
0x115c   : > { %2344 = vrot.lane.b32.xlu1 %v2339_v5, %s4412_s17 }
0x1160   : > { %2556 = vrot.lane.b32.xlu1 %v2551_v6, %s4411_s21  ;;  %s3293_s21 = sshll.u32 %s604_s27, 4 }
0x1161   : > { %s606_s30 = scalar_lea.vmem [#allocation15], %s3293_s21 }
0x1162   : > { %s3132_s12 = sshll.u32 %s606_s30, 4  ;;  %s5164_s12 = int_to_ptr.vmem [resolvable:$true] %s3132_s12 }
0x1163   : > { %s4311_s28 = scalar_lea.vmem %s5164_s12, 256  ;;  %p4318_p5 = scmp.lt.s32.totalorder %s5164_s12, %s4316_s3 }
0x1164   : > { %p4312_p13 = scmp.ne.s32.totalorder %s5164_s12, %s4311_s28 }
0x1166   : > { %p4313_p6 = pnand %p4312_p13, %p5273_p1 }
0x1168   : > { %p4314_p9 = pneg %p4313_p6 }
0x11cb   : > { %v2676_v44 = vpop.xlane.xlu0 %2675 }
0x11cc   : > { %v2673_v1 = vpop.xlane.xlu1 %2672 }
0x11cf   : > { %v2559_v53 = vpop.permute.xlu0 %2558 }
0x11d0   : > { %v2039_v0 = vpop.xlane.xlu1 %2038 }
0x11d1   : > { %4099 = vrcp.f32 %v2039_v0 }
0x11d4   : > { %v2042_v38 = vpop.xlane.xlu1 %2041 }
0x11d5   : > { %4101 = vrcp.f32 %v2042_v38 }
0x11d6   : > { %4103 = vrcp.f32 %v2673_v1 }
0x11d7   : > { %4105 = vrcp.f32 %v2676_v44 }
0x11d8   : > { %v2343_v41 = vpop.permute.xlu1 %2342 }
0x11db   : > { %v4100_v42 = vpop.eup %4099 }
0x11dc   : > { %v2131_v23 = vmul.f32 %v4100_v42, %v5036_v20  ;;  %v2345_v43 = vpop.permute.xlu1 %2344  ;;  %v2780_v20 = vld [vmem:[#allocation12] sm:$0xff] }
0x11dd   : > { %v3793_v54 = vpack.c.bf16 %v2781_v61, %v2780_v20 }
0x11de   : > { %2134 = vst.msk [vmem:[#allocation2] sm:$0xff] %vm774_vm5, %v2131_v23 }
0x11df   : > { %v4102_v21 = vpop.eup %4101  ;;  %2348 = vst.msk [vmem:[#allocation2] sm:$0xff] %vm1186_vm8, %v2343_v41  ;;  %3794 = vmatprep.subr.bf16.mxu0 %v3793_v54 }
0x11e0   : > { %v2133_v45 = vmul.f32 %v4102_v21, %v5034_v19  ;;  %v2557_v48 = vpop.permute.xlu1 %2556  ;;  %3796 = vmatpush3.bf16.msra.mxu0 %v3793_v54  ;;  %v4104_v58 = vpop.eup %4103  ;;  %v3361_v54 = vld [vmem:[%s5224_s14 + $0x2] ss:$0 sm:$0xff] }
0x11e1   : > { %2562 = vst.msk [vmem:[#allocation2] sm:$0xff] %vm1401_vm9, %v2557_v48  ;;  %3798 = vmatprep.subr.bf16.mxu0 %v3797_v57  ;;  %v4106_v62 = vpop.eup %4105 }
0x11e2   : > { %2135 = vst.msk [vmem:[#allocation2 + $0x8] sm:$0xff] %vm774_vm5, %v2133_v45 }
0x11e3   : > { %2349 = vst.msk [vmem:[#allocation2 + $0x8] sm:$0xff] %vm1186_vm8, %v2345_v43 }
0x11e4   : > { %2563 = vst.msk [vmem:[#allocation2 + $0x8] sm:$0xff] %vm1401_vm9, %v2559_v53  ;;  %3800 = vmatpush3.bf16.msra.mxu0 %v3797_v57  ;;  %v3360_v53 = vld [vmem:[%s5223_s13 + $0x2] ss:$0 sm:$0xff] }
0x11e5   : > { %3810 = vmatprep.subr.bf16.mxu0 %v3809_v25 }
0x1212   : > { %v3639_v19 = vpop.f32.mrb[18].mxu0 }
0x1213   : > { %v2755_v59 = vpop.f32.mrb[19].mxu0  ;;  %v2767_v63 = vmul.f32 %v4106_v62, %v3639_v19  ;;  %v3022_v62 = vld [vmem:[%s5221_s11 + $0x38] sm:$0xff] }
0x1214   : > { %v2765_v60 = vmul.f32 %v4104_v58, %v2755_v59 }
0x1216   : > { %2770 = vrot.lane.b32.xlu1 %v2765_v60, %s4413_s26  ;;  %v3021_v60 = vld [vmem:[%s5221_s11 + $0x30] sm:$0xff] }
0x121a   : > { %2772 = vrot.lane.b32.xlu1 %v2767_v63, %s4413_s26  ;;  %v3821_v63 = vpack.c.bf16 %v3022_v62, %v3021_v60 }
0x1288   : > { %v2771_v3 = vpop.permute.xlu1 %2770 }
0x1289   : > { %2776 = vst.msk [vmem:[#allocation2] sm:$0xff] %vm1616_vm10, %v2771_v3  ;;  %v3362_v3 = vld [vmem:[%s5269_s16] ss:$0 sm:$0xff]  ;;  %s4317_s16 = scalar_lea.vmem %s4316_s3, 512 }
0x128a   : > { %p4319_p0 = scmp.lt.s32.totalorder %s4317_s16, %s4311_s28 }
0x128c   : > { %v2773_v29 = vpop.permute.xlu1 %2772  ;;  %p4320_p10 = por %p4319_p0, %p4318_p5 }
0x128d   : > { %2777 = vst.msk [vmem:[#allocation2 + $0x8] sm:$0xff] %vm1616_vm10, %v2773_v29 }
0x128e   : > { %p4321_p2 = pnand %p4320_p10, %p4314_p9 }
0x1290   : > { %v2778_v40 = vld [vmem:[#allocation2] sm:$0xff] }
0x1291   : > { %3648 = vmatprep.mubr.msk.f32.mxu0 %vm626_vm0, %v2778_v40 }
0x1294   : > { %v2779_v4 = vld [vmem:[#allocation2 + $0x8] sm:$0xff] }
0x1295   : > { %3649 = vmatmul.mubr.msk.f32.vlgmr.msra.gmra.mrb[20].mxu0 %vm626_vm0, %v2779_v4 }
0x1296   : > { %3812 = vmatpush3.bf16.msra.mxu0 %v3809_v25 }
0x1297   : > { %3814 = vmatprep.subr.bf16.mxu0 %v3813_v27 }
0x129a   : > { %3816 = vmatpush3.bf16.msra.mxu0 %v3813_v27 }
0x129b   : > { %3818 = vmatprep.subr.bf16.mxu0 %v3817_v33 }
0x129e   : > { %3820 = vmatpush3.bf16.msra.mxu0 %v3817_v33 }
0x129f   : > { %3822 = vmatprep.subr.bf16.mxu0 %v3821_v63 }
0x12a2   : > { %3824 = vmatpush3.bf16.msra.mxu0 %v3821_v63 }
0x1368   : > { %v3650_v7 = vpop.f32.mrb[20].mxu0 }
0x1369   : > { %v5104_v55 = vadd.f32 %v3650_v7, %v4934_v28  ;;  %v2856_v8 = vpop.f32.mrb[21].mxu0 }
0x136a   : > { %v5107_v52 = vadd.f32 %v2856_v8, %v4937_v31 }
0x136b   : > { %v2872_v9 = vsel %vm626_vm0, %v5104_v55, 0.0 }
0x136c   : > { %2873 = vadd.xlane.f32.xlu0 %v2872_v9  ;;  %v2869_v37 = vsel %vm626_vm0, %v5107_v52, 0.0 }
0x136d   : > { %2870 = vadd.xlane.f32.xlu1 %v2869_v37 }
0x13f9   : > { %v2874_v39 = vpop.xlane.xlu0 %2873 }
0x13fa   : > { %v2876_v10 = vmul.f32 0.03125, %v2874_v39  ;;  %v2871_v11 = vpop.xlane.xlu1 %2870  ;;  %v3367_v39 = vld [vmem:[%s5270_s10] ss:$0 sm:$0xff] }
0x13fb   : > { %v2875_v51 = vmul.f32 0.03125, %v2871_v11 }
0x13fc   : > { %v2878_v12 = vsub.f32 %v5104_v55, %v2876_v10 }
0x13fd   : > { %v2877_v28 = vsub.f32 %v5107_v52, %v2875_v51 }
0x13fe   : > { %v2880_v47 = vmul.f32 %v2878_v12, %v2878_v12  ;;  %v2908_v56 = vmul.f32 %v3360_v53, %v2878_v12 }
0x13ff   : > { %v2879_v13 = vmul.f32 %v2877_v28, %v2877_v28  ;;  %v2907_v20 = vmul.f32 %v3360_v53, %v2877_v28 }
0x1400   : > { %v2884_v50 = vsel %vm626_vm0, %v2880_v47, 0.0 }
0x1401   : > { %v2881_v31 = vsel %vm626_vm0, %v2879_v13, 0.0 }
0x1402   : > { %2882 = vadd.xlane.f32.xlu1 %v2881_v31 }
0x1406   : > { %2885 = vadd.xlane.f32.xlu1 %v2884_v50 }
0x148f   : > { %v2883_v34 = vpop.xlane.xlu1 %2882 }
0x1490   : > { %v2887_v35 = vmul.f32 0.032258064, %v2883_v34 }
0x1492   : > { %4107 = vrsqrt.f32 %v2887_v35  ;;  %vm2891_vm15 = vcmp.eq.f32.partialorder %v2887_v35, inf  ;;  %v2894_v0 = vand.u32 2147483648, %v2887_v35  ;;  %vm2893_vm1 = vcmp.eq.f32.partialorder %v2887_v35, 0.0 }
0x1493   : > { %v2886_v5 = vpop.xlane.xlu1 %2885 }
0x1494   : > { %v2888_v36 = vmul.f32 0.032258064, %v2886_v5 }
0x1496   : > { %4109 = vrsqrt.f32 %v2888_v36  ;;  %vm2898_vm2 = vcmp.eq.f32.partialorder %v2888_v36, inf  ;;  %v2901_v44 = vand.u32 2147483648, %v2888_v36  ;;  %vm2900_vm3 = vcmp.eq.f32.partialorder %v2888_v36, 0.0 }
0x149c   : > { %v4108_v6 = vpop.eup %4107 }
0x149d   : > { %v2890_v1 = vmul.f32 %v4108_v6, %v2887_v35 }
0x149f   : > { %v2892_v38 = vsel %vm2891_vm15, %v2887_v35, %v2890_v1 }
0x14a0   : > { %v4110_v41 = vpop.eup %4109  ;;  %v2895_v42 = vsel %vm2893_vm1, %v2894_v0, %v2892_v38 }
0x14a1   : > { %v2897_v23 = vmul.f32 %v4110_v41, %v2888_v36  ;;  %v2909_v43 = vadd.f32 1e-06, %v2895_v42 }
0x14a3   : > { %v2899_v21 = vsel %vm2898_vm2, %v2888_v36, %v2897_v23  ;;  %4111 = vrcp.f32 %v2909_v43 }
0x14a4   : > { %v2902_v45 = vsel %vm2900_vm3, %v2901_v44, %v2899_v21 }
0x14a5   : > { %v2910_v48 = vadd.f32 1e-06, %v2902_v45 }
0x14a7   : > { %4113 = vrcp.f32 %v2910_v48 }
0x14ad   : > { %v4112_v61 = vpop.eup %4111 }
0x14ae   : > { %v2912_v30 = vmul.f32 %v4112_v61, %v2907_v20 }
0x14b0   : > { %v2919_v57 = vadd.f32 %v3361_v54, %v2912_v30 }
0x14b1   : > { %v4114_v19 = vpop.eup %4113 }
0x14b2   : > { %v2914_v58 = vmul.f32 %v4114_v19, %v2908_v56  ;;  %3659 = vmatprep.mubr.msk.f32.mxu1 %vm626_vm0, %v2919_v57 }
0x14b4   : > { %v2920_v59 = vadd.f32 %v3361_v54, %v2914_v58 }
0x14b6   : > { %3660 = vmatmul.mubr.msk.f32.vlgmr.msra.gmra.mrb[20].mxu1 %vm626_vm0, %v2920_v59 }
0x1589   : > { %v3661_v29 = vpop.f32.mrb[20].mxu1 }
0x158a   : > { %v3010_v40 = vadd.f32 %v3661_v29, %v3362_v3  ;;  %v3004_v4 = vpop.f32.mrb[21].mxu1 }
0x158b   : > { %v3005_v7 = vadd.f32 %v3362_v3, %v3004_v4 }
0x158c   : > { %v3014_v9 = vmax.f32 %v3010_v40, 0.0 }
0x158d   : > { %v3013_v8 = vmax.f32 %v3005_v7, 0.0 }
0x158f   : > { %3678 = vmatprep.mubr.msk.f32.mxu0 %vm3023_vm4, %v3013_v8 }
0x1590   : > { %3679 = vmatmul.mubr.msk.f32.vlgmr.msra.gmra.mrb[22].mxu0 %vm3023_vm4, %v3014_v9 }
0x1663   : > { %v3680_v37 = vpop.f32.mrb[22].mxu0 }
0x1664   : > { %v3106_v10 = vadd.f32 %v3680_v37, %v5104_v55  ;;  %v3096_v11 = vpop.f32.mrb[23].mxu0 }
0x1665   : > { %v3105_v51 = vadd.f32 %v3096_v11, %v5107_v52 }
0x1666   : > { %v3115_v12 = vadd.f32 %v3367_v39, %v3106_v10 }
0x1667   : > { %v3114_v28 = vadd.f32 %v3367_v39, %v3105_v51 }
0x1668   : > { %3117 = vst.msk [vmem:[%s606_s30 + $0x8] sm:$0xff] %vm626_vm0, %v3115_v12 }
0x1669   : > { %3116 = vst.msk [vmem:[%s606_s30] sm:$0xff] %vm626_vm0, %v3114_v28 }
0x166a   : > { %4324 = shalt.err (!%p4321_p2)
}
0x166b   : > { %s4325_s27 = scalar_lea.hbm %s5162_s23, 256  ;;  %s4329_s19 = scalar_lea.hbm %s5272_s24, 512 }
0x166c   : > { %p4326_p3 = scmp.ne.s32.totalorder %s5162_s23, %s4325_s27  ;;  %p4330_p7 = scmp.lt.u32.totalorder %s5162_s23, %s5272_s24 }
0x166d   : > { %p4331_p8 = scmp.lt.u32.totalorder %s4329_s19, %s4325_s27  ;;  %p4333_p13 = scmp.lt.u32.totalorder %s4325_s27, %s5162_s23 }
0x166e   : > { %p4327_p4 = pnand %p4326_p3, %p5273_p1 }
0x166f   : > { %p4332_p11 = por %p4331_p8, %p4330_p7 }
0x1670   : > { %p4328_p12 = pneg %p4327_p4 }
0x1671   : > { %p4334_p6 = por %p4333_p13, %p4332_p11 }
0x1673   : > { %p4335_p9 = pnand %p4334_p6, %p4328_p12 }
0x1675   : > { %4338 = shalt.err (!%p4335_p9)
}
0x1676   : > { %s4415_s30 = smov 128  }
0x1677   : > { %3853 = dma.vmem_to_hbm [thread:$0]  (%p5273_p1), %s5164_s12, 256, %s5162_s23, %s5168_s22, %s4415_s30, %s4415_s30, %s4412_s17  }
0x1678 PF: > { %s5274_s25 = sld [smem:[#allocation24_spill]]  ;;  %s5275_s29 = sld [smem:[#allocation21_spill]] }
0x1679   : > { %s5276_s28 = sld [smem:[#allocation28_spill]] }
0x167e   : > { %p3895_p5 = scmp.ge.s32.totalorder %s5274_s25, 2  ;;  %s3147_s20 = sand.u32 1, %s5275_s29  }
0x167f   : > { %p5277_p0 = scmp.ne.s32.totalorder %s5276_s28, 0  ;;  %s3148_s3 = scalar_lea.sflag [#allocation5], %s3147_s20 }
0x1681   : > { %p3878_p10 = pnand %p3895_p5, %p5277_p0 }
0x1683   : > { %4372 = dma.done.wait (!%p3878_p10), %s3148_s3, 256  }
0x1684   : > { %4374 = vsyncadd (!%p3878_p10), %s3148_s3, 4294967040  ;;  %s5278_s21 = sld [smem:[#allocation25_spill]]  ;;  %s5279_s18 = sld [smem:[#allocation22_spill]] }
0x1685   : > { %s5280_s19 = sld [smem:[#allocation23_spill]]  ;;  %s5281_s20 = sld [smem:[#allocation26_spill]] }
0x168a   : > { %p29_p2 = scmp.ge.s32.totalorder %s5278_s21, 4  }
0x168c   :  { %31 = sbr.rel (!%p29_p2) target bundleno = 12 (0xc), region = 147 }
0x1693   :  { %3153 = vsyncpa [#allocation4], 1 }
0x1694   :  { %3155 = vsyncpa [#allocation4 + $0x1], 1 }
0x1695   :  { %3156 = vsyncpa [#allocation7], 1 }
0x1696   :  { %3157 = vsyncpa [#allocation10], 1 }
0x1697   :  { %3158 = vsyncpa [#allocation13], 1 }
0x1698   :  { %3159 = vsyncpa [#allocation5], 1 }
0x1699   :  { %3161 = vsyncpa [#allocation5 + $0x1], 1 }

</bundles_post_ra>
